<compile_context>
chip_gen: v7x
topology: tpu7x:2x2x1
jax: 0.10.0
libtpu: 0.0.40
codegen_flags: <defaults>
</compile_context>

<pallas_src>
import functools

import jax
import jax.numpy as jnp
from jax.experimental import pallas as pl
from jax.experimental.pallas import tpu as pltpu


MATMUL_COMPUTE_DTYPE = jnp.bfloat16   # MXU operand dtype (accumulation is f32)
ACT_DTYPE = jnp.bfloat16              # glue-only intermediate activations


# --------------------------------------------------------------------------
# Tile selection helpers.
# --------------------------------------------------------------------------
def _pick_m_tile(m, cap=512):
    """Large row tile; prefer >=2 row steps (feeds both v7x TensorCores)."""
    for t in (512, 256, 128):
        if t <= cap and m % t == 0 and m // t >= 2:
            return t, m
    for t in (512, 256, 128):
        if t <= cap and m % t == 0:
            return t, m
    if m <= cap and m % 8 == 0:
        return m, m
    if m < 8:
        return 8, 8
    t = min(cap, 256)
    return t, ((m + t - 1) // t) * t


def _pick_n_tile(cin, cout, cap_bytes=8 * 1024 * 1024):
    """Keep the whole weight resident (tn = Cout) when it fits comfortably in
    VMEM so it is DMA'd once for the entire M sweep; else a lane-dense divisor."""
    if cout <= 512 or cin * cout * 4 <= cap_bytes:
        return cout
    for t in (512, 384, 256, 128):
        if cout % t == 0:
            return t
    return cout


def _pick_t_tile(t_len, cap=256):
    """Token tile for the attention core: lane-dense multiple of 128."""
    tp = max(128, ((t_len + 127) // 128) * 128)
    tt = min(cap, tp)
    tp = ((t_len + tt - 1) // tt) * tt
    return tt, tp


# --------------------------------------------------------------------------
# Pallas kernel 1: tiled matmul + bias (+ fused residual, + fused BN stats).
#   x: (tm, Cin), w: (Cin, tn), b: (1, tn), [r: (tm, tn)] -> o: (tm, tn)
#   optional side outputs: per-tile column sum / sum-of-squares of the f32
#   result (used to finalize BatchNorm batch statistics on tiny partials).
# Operands are cast to bf16 in-kernel (no extra HBM convert pass); accumulate
# in f32 on the MXU.
# --------------------------------------------------------------------------
def _make_mm_kernel(has_residual, has_stats):
    def kernel(*refs):
        if has_residual:
            x_ref, w_ref, b_ref, r_ref = refs[:4]
            outs = refs[4:]
        else:
            x_ref, w_ref, b_ref = refs[:3]
            r_ref = None
            outs = refs[3:]
        o_ref = outs[0]
        acc = jnp.dot(x_ref[...].astype(MATMUL_COMPUTE_DTYPE),
                      w_ref[...].astype(MATMUL_COMPUTE_DTYPE),
                      preferred_element_type=jnp.float32)
        acc = acc + b_ref[...]
        if has_residual:
            acc = acc + r_ref[...].astype(jnp.float32)
        o_ref[...] = acc.astype(o_ref.dtype)
        if has_stats:
            outs[1][...] = jnp.sum(acc, axis=0, keepdims=True)[None, :, :]
            outs[2][...] = jnp.sum(acc * acc, axis=0, keepdims=True)[None, :, :]
    return kernel


def matmul_bias(x, w, *, bias=None, residual=None, out_dtype=jnp.float32,
                with_stats=False, tm_cap=512):
    """out = x @ w + bias (+ residual); optionally also (mean, var) over rows."""
    M, Cin = x.shape
    Cout = w.shape[1]
    bias = (jnp.zeros((1, Cout), jnp.float32) if bias is None
            else bias.reshape(1, Cout).astype(jnp.float32))

    tm, Mp = _pick_m_tile(M, tm_cap)
    tn = _pick_n_tile(Cin, Cout)
    stats_in_kernel = with_stats and (Mp == M)   # pad rows would corrupt sums
    if Mp != M:
        x = jnp.pad(x, ((0, Mp - M), (0, 0)))
        if residual is not None:
            residual = jnp.pad(residual, ((0, Mp - M), (0, 0)))

    w = w.astype(MATMUL_COMPUTE_DTYPE)
    n_i, n_j = Mp // tm, Cout // tn

    in_specs = [
        pl.BlockSpec((tm, Cin), lambda i, j: (i, 0)),
        pl.BlockSpec((Cin, tn), lambda i, j: (0, j)),   # resident when n_j == 1
        pl.BlockSpec((1, tn), lambda i, j: (0, j)),
    ]
    args = [x, w, bias]
    if residual is not None:
        in_specs.append(pl.BlockSpec((tm, tn), lambda i, j: (i, j)))
        args.append(residual)

    out_shapes = [jax.ShapeDtypeStruct((Mp, Cout), out_dtype)]
    out_specs = [pl.BlockSpec((tm, tn), lambda i, j: (i, j))]
    if stats_in_kernel:
        out_shapes += [jax.ShapeDtypeStruct((n_i, 1, Cout), jnp.float32)] * 2
        out_specs += [pl.BlockSpec((1, 1, tn), lambda i, j: (i, 0, j))] * 2

    res = pl.pallas_call(
        _make_mm_kernel(residual is not None, stats_in_kernel),
        out_shape=tuple(out_shapes) if len(out_shapes) > 1 else out_shapes[0],
        grid_spec=pltpu.PrefetchScalarGridSpec(
            num_scalar_prefetch=0,
            grid=(n_i, n_j),
            in_specs=in_specs,
            out_specs=tuple(out_specs) if len(out_specs) > 1 else out_specs[0],
        ),
        compiler_params=pltpu.CompilerParams(
            dimension_semantics=("parallel", "parallel"),
            # 32 MiB is safe on v7x's 64 MiB VMEM; v5e/v6e (128 MiB) could go
            # higher but blocks here fit comfortably either way.
            vmem_limit_bytes=32 * 1024 * 1024,
        ),
    )(*args)

    if stats_in_kernel:
        out, s1, s2 = res
    else:
        out = res
    if Mp != M:
        out = out[:M]
    if not with_stats:
        return out
    if stats_in_kernel:
        mean = jnp.sum(s1, axis=(0, 1)) / M
        var = jnp.sum(s2, axis=(0, 1)) / M - mean * mean
    else:
        of = out.astype(jnp.float32)
        mean = jnp.mean(of, axis=0)
        var = jnp.var(of, axis=0)
    return out, mean, var


# --------------------------------------------------------------------------
# Pallas kernel 2: outlook-attention core, lane-dense over tokens.
#   a: (K2_i, K2_d, T)  logits   (i = target tap on the grid, d = source tap)
#   v: (K2_d, hd,  T)   values
#   o: (K2_i, hd,  T)   output
# Grid = (token blocks, i).  Per step: softmax over d (axis reductions -> XLU,
# exp -> EUP, exact divide) and an unrolled broadcast-FMA contraction over the
# 9 source taps (v sliced per tap -> tiny live set, no vreg spills).
# --------------------------------------------------------------------------
def _outlook_attn_kernel(a_ref, v_ref, o_ref):
    a = a_ref[0].astype(jnp.float32)                 # (K2, tt)
    m = jnp.max(a, axis=0, keepdims=True)            # XLU reduce
    p = jnp.exp(a - m)                                # EUP
    s = jnp.sum(p, axis=0, keepdims=True)             # XLU reduce
    p = p / s                                          # exact softmax divide
    hd = v_ref.shape[1]
    acc = jnp.zeros((hd, a.shape[1]), jnp.float32)
    for d in range(v_ref.shape[0]):                   # K2 = 9, unrolled VPU FMAs
        acc = acc + p[d:d + 1, :] * v_ref[d].astype(jnp.float32)
    o_ref[0] = acc.astype(o_ref.dtype)


def outlook_attention_core(a_lane, v_lane, *, t_cap=256):
    K2, _, T = a_lane.shape
    hd = v_lane.shape[1]
    tt, Tp = _pick_t_tile(T, t_cap)
    if Tp != T:
        # Zero padding is safe: softmax of zeros is uniform, v is zero -> out 0.
        a_lane = jnp.pad(a_lane, ((0, 0), (0, 0), (0, Tp - T)))
        v_lane = jnp.pad(v_lane, ((0, 0), (0, 0), (0, Tp - T)))
    out = pl.pallas_call(
        _outlook_attn_kernel,
        out_shape=jax.ShapeDtypeStruct((K2, hd, Tp), v_lane.dtype),
        grid_spec=pltpu.PrefetchScalarGridSpec(
            num_scalar_prefetch=0,
            # i innermost: the v block index is constant across the i sweep, so
            # v is fetched once per token block.
            grid=(Tp // tt, K2),
            in_specs=[
                pl.BlockSpec((1, K2, tt), lambda t, i: (i, 0, t)),
                pl.BlockSpec((K2, hd, tt), lambda t, i: (0, 0, t)),
            ],
            out_specs=pl.BlockSpec((1, hd, tt), lambda t, i: (i, 0, t)),
        ),
        compiler_params=pltpu.CompilerParams(
            dimension_semantics=("parallel", "parallel")),
    )(a_lane, v_lane)
    return out[:, :, :T] if Tp != T else out


# --------------------------------------------------------------------------
# fold (F.fold): sum overlapping KxK windows back onto the (H, W) grid.
# Phase-decomposed: taps are grouped by their output phase (offset mod stride),
# summed with small shifts at L resolution, then the S x S phases are
# interleaved — ~2 passes over the patch tensor instead of K^2 full canvases.
# TODO(synk): fuse fold + the proj matmul so the folded image never hits HBM.
# --------------------------------------------------------------------------
def _fold_nhwc_phased(patches, H, W, K, P, S):
    B, nH, nW, _, _, C = patches.shape
    nJh, nJw = H // S, W // S

    # ----- rows: resolve kh placement, keep kw as a tap axis -----
    row_parts = []
    for rh in range(S):
        acc = None
        for kh in range(K):
            if (kh - P - rh) % S != 0:
                continue
            shift = (kh - P - rh) // S            # output row j uses lh = j - shift
            lo, hi = max(0, shift), min(nJh, nH + shift)
            if lo >= hi:
                continue
            sl = patches[:, lo - shift:hi - shift, :, kh, :, :]   # (B,hi-lo,nW,K,C)
            sl = jnp.pad(sl, ((0, 0), (lo, nJh - hi), (0, 0), (0, 0), (0, 0)))
            acc = sl if acc is None else acc + sl
        if acc is None:
            acc = jnp.zeros((B, nJh, nW, K, C), patches.dtype)
        row_parts.append(acc)
    inter = jnp.stack(row_parts, axis=2).reshape(B, H, nW, K, C)

    # ----- columns -----
    col_parts = []
    for rw in range(S):
        acc = None
        for kw in range(K):
            if (kw - P - rw) % S != 0:
                continue
            shift = (kw - P - rw) // S
            lo, hi = max(0, shift), min(nJw, nW + shift)
            if lo >= hi:
                continue
            sl = inter[:, :, lo - shift:hi - shift, kw, :]        # (B,H,hi-lo,C)
            sl = jnp.pad(sl, ((0, 0), (0, 0), (lo, nJw - hi), (0, 0)))
            acc = sl if acc is None else acc + sl
        if acc is None:
            acc = jnp.zeros((B, H, nJw, C), inter.dtype)
        col_parts.append(acc)
    return jnp.stack(col_parts, axis=3).reshape(B, H, W, C)


def _fold_nhwc_general(patches, H, W, K, P, S):
    """Fallback (any H/W/S): fused sum of K^2 dilated + padded slices."""
    B, nH, nW, _, _, C = patches.shape
    Hp, Wp = H + 2 * P, W + 2 * P
    dh, dw = S * (nH - 1) + 1, S * (nW - 1) + 1
    terms = []
    for kh in range(K):
        for kw in range(K):
            sl = patches[:, :, :, kh, kw, :]
            if S > 1:
                zh = jnp.zeros((B, nH, S - 1, nW, C), sl.dtype)
                sl = jnp.concatenate([sl[:, :, None], zh], axis=2)
                sl = sl.reshape(B, nH * S, nW, C)[:, :dh]
                zw = jnp.zeros((B, dh, nW, S - 1, C), sl.dtype)
                sl = jnp.concatenate([sl[:, :, :, None], zw], axis=3)
                sl = sl.reshape(B, dh, nW * S, C)[:, :, :dw]
            terms.append(jnp.pad(
                sl, ((0, 0), (kh, Hp - kh - dh), (kw, Wp - kw - dw), (0, 0))))
    canvas = functools.reduce(jnp.add, terms)
    return canvas[:, P:P + H, P:P + W, :]


def _fold_nhwc(patches, H, W, K, P, S):
    if H % S == 0 and W % S == 0:
        return _fold_nhwc_phased(patches, H, W, K, P, S)
    return _fold_nhwc_general(patches, H, W, K, P, S)


# --------------------------------------------------------------------------
# Parameters. Conv weights stored as (Cin, Cout) = transpose of PyTorch's
# (Cout, Cin, 1, 1). BatchNorm gamma=1 / beta=0 as in nn.BatchNorm2d init.
# --------------------------------------------------------------------------
def init_params(key, dim, num_heads, kernel_size, hidden):
    k = jax.random.split(key, 6)
    s = 0.05
    return {
        "bn1_gamma": jnp.ones((dim,), jnp.float32),
        "bn1_beta": jnp.zeros((dim,), jnp.float32),
        "v_w": s * jax.random.normal(k[0], (dim, dim), jnp.float32),
        "v_b": s * jax.random.normal(k[1], (dim,), jnp.float32),
        "attn_w": s * jax.random.normal(k[2], (dim, kernel_size ** 4 * num_heads), jnp.float32),
        "proj_w": s * jax.random.normal(k[3], (dim, dim), jnp.float32),
        "bn2_gamma": jnp.ones((dim,), jnp.float32),
        "bn2_beta": jnp.zeros((dim,), jnp.float32),
        "mlp_w1": s * jax.random.normal(k[4], (dim, hidden), jnp.float32),
        "bn3_gamma": jnp.ones((hidden,), jnp.float32),
        "bn3_beta": jnp.zeros((hidden,), jnp.float32),
        "mlp_w2": s * jax.random.normal(k[5], (hidden, dim), jnp.float32),
    }


# --------------------------------------------------------------------------
# Forward pass (training-mode BatchNorm = batch statistics; dropout p = 0).
# --------------------------------------------------------------------------
def outlooker_forward(params, x_nchw, *, num_heads, kernel_size, padding, stride):
    x = jnp.transpose(x_nchw, (0, 2, 3, 1)).astype(jnp.float32)   # NCHW -> NHWC
    B, H, W, C = x.shape
    K, P, S = kernel_size, padding, stride
    K2 = K * K
    n = num_heads
    hd = C // n
    nH = (H + 2 * P - K + S) // S
    nW = (W + 2 * P - K + S) // S
    L = nH * nW
    eps = 1e-5

    # ----- norm_1 (batch-stats BatchNorm2d) as a per-channel affine -----
    mean1 = jnp.mean(x, axis=(0, 1, 2))
    var1 = jnp.var(x, axis=(0, 1, 2))
    scale1 = params["bn1_gamma"] / jnp.sqrt(var1 + eps)
    shift1 = params["bn1_beta"] - mean1 * scale1

    # Pre-fold the BN affine into the v / attn conv weights (tiny (Cin,Cout) ops).
    v_w = scale1[:, None] * params["v_w"]
    v_b = shift1 @ params["v_w"] + params["v_b"]
    attn_w = scale1[:, None] * params["attn_w"]
    attn_b = shift1 @ params["attn_w"]

    # ----- OutlookAttention -----
    x_flat = x.reshape(B * H * W, C)
    v_flat = matmul_bias(x_flat, v_w, bias=v_b, out_dtype=ACT_DTYPE)   # v(norm_1(x))
    v_img = v_flat.reshape(B, H, W, C)

    # nn.Unfold(K, padding=P, stride=S) built directly in the lane-dense layout
    # (K2_d, hd, B*heads*L) consumed by the attention kernel (bf16 glue).
    # TODO(synk): fuse this gather + relayout into the attention kernel (read
    # v_img per (b, head) block) so the K^2-inflated tensor never hits HBM.
    v_pad = jnp.pad(v_img, ((0, 0), (P, P), (P, P), (0, 0)))
    slices = []
    for kh in range(K):
        for kw in range(K):
            sl = v_pad[:, kh:kh + S * (nH - 1) + 1:S, kw:kw + S * (nW - 1) + 1:S, :]
            sl = sl.reshape(B, L, n, hd).transpose(3, 0, 2, 1)     # (hd, B, n, L)
            slices.append(sl)
    v_lane = jnp.stack(slices, axis=0).reshape(K2, hd, B * n * L)

    # adaptive_avg_pool2d(x) -> (nH, nW); the norm_1 affine commutes with the
    # average pool, so it is folded into the attn conv weights above.
    assert H % nH == 0 and W % nW == 0  # TODO(synk): general (non-divisible) adaptive pooling bins
    xp = x.reshape(B, nH, H // nH, nW, W // nW, C).mean(axis=(2, 4))
    attn_flat = matmul_bias(xp.reshape(B * L, C), attn_w, bias=attn_b,
                            out_dtype=ACT_DTYPE)                   # (B*L, K^4*n)

    # Channel order of the attn conv output is ((i d) n) with heads innermost
    # (matches the spec's rearrange 'b (k n) h w -> b n (h w) k').
    # TODO(synk): fuse this relayout (and the output one below) into the
    # attention kernel to avoid the extra HBM pass over the logits.
    a = attn_flat.reshape(B, L, K2, K2, n)
    a_lane = a.transpose(2, 3, 0, 4, 1).reshape(K2, K2, B * n * L)

    # softmax over d + einsum('bnlid,bnldh->bnlih')  -- lane-dense Pallas kernel
    o_lane = outlook_attention_core(a_lane, v_lane)                # (K2, hd, T)

    # F.fold back onto the (H, W) grid (channel order (n h), kernel tap inner).
    o = o_lane.reshape(K2, hd, B, n, L).transpose(2, 4, 0, 3, 1)   # (B, L, K2, n, hd)
    patches_out = o.reshape(B, nH, nW, K, K, C)
    folded = _fold_nhwc(patches_out, H, W, K, P, S)

    # proj (1x1 conv, no bias) with the residual `+ x` fused into the epilogue
    # and the BN2 batch statistics emitted as kernel side outputs.
    out1_flat, mean2, var2 = matmul_bias(
        folded.reshape(B * H * W, C), params["proj_w"],
        residual=x_flat, with_stats=True)

    # ----- norm_2 + MLP -----
    scale2 = params["bn2_gamma"] / jnp.sqrt(var2 + eps)
    shift2 = params["bn2_beta"] - mean2 * scale2
    w1 = scale2[:, None] * params["mlp_w1"]
    b1 = shift2 @ params["mlp_w1"]

    # conv_1(norm_2(.)) with BN3 batch statistics fused into the epilogue.
    h1, mean3, var3 = matmul_bias(out1_flat, w1, bias=b1, with_stats=True)

    scale3 = params["bn3_gamma"] / jnp.sqrt(var3 + eps)
    shift3 = params["bn3_beta"] - mean3 * scale3
    # BN3 affine + exact-erf GELU as one fused XLA elementwise pass, emitted
    # directly in bf16 for the conv_2 matmul.
    # TODO(synk): move into the conv_2 Pallas kernel once erf has a guaranteed
    # Mosaic lowering (would also save the g write+read).
    g = jax.nn.gelu(h1 * scale3 + shift3,
                    approximate=False).astype(MATMUL_COMPUTE_DTYPE)

    # conv_2 with the residual `+ out1` fused into the epilogue.
    y = matmul_bias(g, params["mlp_w2"], residual=out1_flat).reshape(B, H, W, C)
    return jnp.transpose(y, (0, 3, 1, 2))                          # back to NCHW


if __name__ == "__main__":
    B, C, H, W = 2, 32, 8, 8
    num_heads, kernel_size, padding, stride = 4, 3, 1, 2
    mlp_hidden_ratio = 2.0
    hidden = int(mlp_hidden_ratio * C)

    key = jax.random.PRNGKey(0)
    kx, kp = jax.random.split(key)
    x = jax.random.normal(kx, (B, C, H, W), jnp.float32)
    params = init_params(kp, C, num_heads, kernel_size, hidden)

    fwd = functools.partial(
        outlooker_forward,
        num_heads=num_heads,
        kernel_size=kernel_size,
        padding=padding,
        stride=stride,
    )
    y = jax.jit(fwd)(params, x)
    jax.block_until_ready(y)
    assert y.shape == (B, C, H, W)
    print("KERNEL_OK")
</pallas_src>

<mosaic_0001>
module attributes {stable_mosaic.version = 11 : i64} {
  func.func @kernel(%arg0: i32, %arg1: i32, %arg2: memref<128x32xf32, #tpu.memory_space<vmem>>, %arg3: memref<32x32xbf16, #tpu.memory_space<vmem>>, %arg4: memref<1x32xf32, #tpu.memory_space<vmem>>, %arg5: memref<128x32xbf16, #tpu.memory_space<vmem>>) attributes {dimension_semantics = [#tpu.dimension_semantics<parallel>, #tpu.dimension_semantics<parallel>], iteration_bounds = array<i64: 1, 1>, scalar_prefetch = 0 : i64, scratch_operands = 0 : i64, tpu.core_type = #tpu.core_type<tc>, window_params = [{transform_indices = @transform_0, window_bounds = array<i64: 128, 32>}, {transform_indices = @transform_1, window_bounds = array<i64: 32, 32>}, {transform_indices = @transform_2, window_bounds = array<i64: 1, 32>}, {transform_indices = @transform_3, window_bounds = array<i64: 128, 32>}]} {
    %c0 = arith.constant 0 : index
    %c0_0 = arith.constant 0 : index
    %0 = vector.load %arg2[%c0, %c0_0] : memref<128x32xf32, #tpu.memory_space<vmem>>, vector<128x32xf32>
    %1 = arith.truncf %0 : vector<128x32xf32> to vector<128x32xbf16>
    %c0_1 = arith.constant 0 : index
    %c0_2 = arith.constant 0 : index
    %2 = vector.load %arg3[%c0_1, %c0_2] : memref<32x32xbf16, #tpu.memory_space<vmem>>, vector<32x32xbf16>
    %cst = arith.constant dense<0.000000e+00> : vector<128x32xf32>
    %3 = tpu.matmul %1, %2, %cst {dimension_numbers = #tpu.dot_dimension_numbers<[1], [0], [0], [1], [0, 0, 1, 1], [], []>} : vector<128x32xbf16>, vector<32x32xbf16>, vector<128x32xf32> -> vector<128x32xf32>
    %c0_3 = arith.constant 0 : index
    %c0_4 = arith.constant 0 : index
    %4 = vector.load %arg4[%c0_3, %c0_4] : memref<1x32xf32, #tpu.memory_space<vmem>>, vector<1x32xf32>
    %5 = vector.broadcast %4 : vector<1x32xf32> to vector<128x32xf32>
    %6 = arith.addf %3, %5 : vector<128x32xf32>
    %7 = arith.truncf %6 : vector<128x32xf32> to vector<128x32xbf16>
    %c0_5 = arith.constant 0 : index
    %c0_6 = arith.constant 0 : index
    %8 = vector.load %arg5[%c0_5, %c0_6] : memref<128x32xbf16, #tpu.memory_space<vmem>>, vector<128x32xbf16>
    tpu.vector_store %arg5[%c0_5, %c0_6], %7 {strides = array<i32>} : memref<128x32xbf16, #tpu.memory_space<vmem>>, vector<128x32xbf16>,
    return
  }
  func.func @transform_0(%arg0: i32, %arg1: i32) -> (i32, i32) {
    %c0_i32 = arith.constant 0 : i32
    %c0_i32_0 = arith.constant 0 : i32
    return %arg0, %c0_i32 : i32, i32
  }
  func.func @transform_1(%arg0: i32, %arg1: i32) -> (i32, i32) {
    %c0_i32 = arith.constant 0 : i32
    %c0_i32_0 = arith.constant 0 : i32
    return %c0_i32, %arg1 : i32, i32
  }
  func.func @transform_2(%arg0: i32, %arg1: i32) -> (i32, i32) {
    %c0_i32 = arith.constant 0 : i32
    %c0_i32_0 = arith.constant 0 : i32
    return %c0_i32, %arg1 : i32, i32
  }
  func.func @transform_3(%arg0: i32, %arg1: i32) -> (i32, i32) {
    %c0_i32 = arith.constant 0 : i32
    return %arg0, %arg1 : i32, i32
  }
}

module attributes {stable_mosaic.version = 11 : i64} {
  func.func @kernel(%arg0: i32, %arg1: i32, %arg2: memref<32x32xf32, #tpu.memory_space<vmem>>, %arg3: memref<32x324xbf16, #tpu.memory_space<vmem>>, %arg4: memref<1x324xf32, #tpu.memory_space<vmem>>, %arg5: memref<32x324xbf16, #tpu.memory_space<vmem>>) attributes {dimension_semantics = [#tpu.dimension_semantics<parallel>, #tpu.dimension_semantics<parallel>], iteration_bounds = array<i64: 1, 1>, scalar_prefetch = 0 : i64, scratch_operands = 0 : i64, tpu.core_type = #tpu.core_type<tc>, window_params = [{transform_indices = @transform_0, window_bounds = array<i64: 32, 32>}, {transform_indices = @transform_1, window_bounds = array<i64: 32, 324>}, {transform_indices = @transform_2, window_bounds = array<i64: 1, 324>}, {transform_indices = @transform_3, window_bounds = array<i64: 32, 324>}]} {
    %c0 = arith.constant 0 : index
    %c0_0 = arith.constant 0 : index
    %0 = vector.load %arg2[%c0, %c0_0] : memref<32x32xf32, #tpu.memory_space<vmem>>, vector<32x32xf32>
    %1 = arith.truncf %0 : vector<32x32xf32> to vector<32x32xbf16>
    %c0_1 = arith.constant 0 : index
    %c0_2 = arith.constant 0 : index
    %2 = vector.load %arg3[%c0_1, %c0_2] : memref<32x324xbf16, #tpu.memory_space<vmem>>, vector<32x324xbf16>
    %cst = arith.constant dense<0.000000e+00> : vector<32x324xf32>
    %3 = tpu.matmul %1, %2, %cst {dimension_numbers = #tpu.dot_dimension_numbers<[1], [0], [0], [1], [0, 0, 1, 1], [], []>} : vector<32x32xbf16>, vector<32x324xbf16>, vector<32x324xf32> -> vector<32x324xf32>
    %c0_3 = arith.constant 0 : index
    %c0_4 = arith.constant 0 : index
    %4 = vector.load %arg4[%c0_3, %c0_4] : memref<1x324xf32, #tpu.memory_space<vmem>>, vector<1x324xf32>
    %5 = vector.broadcast %4 : vector<1x324xf32> to vector<32x324xf32>
    %6 = arith.addf %3, %5 : vector<32x324xf32>
    %7 = arith.truncf %6 : vector<32x324xf32> to vector<32x324xbf16>
    %c0_5 = arith.constant 0 : index
    %c0_6 = arith.constant 0 : index
    %8 = vector.load %arg5[%c0_5, %c0_6] : memref<32x324xbf16, #tpu.memory_space<vmem>>, vector<32x324xbf16>
    tpu.vector_store %arg5[%c0_5, %c0_6], %7 {strides = array<i32>} : memref<32x324xbf16, #tpu.memory_space<vmem>>, vector<32x324xbf16>,
    return
  }
  func.func @transform_0(%arg0: i32, %arg1: i32) -> (i32, i32) {
    %c0_i32 = arith.constant 0 : i32
    %c0_i32_0 = arith.constant 0 : i32
    return %arg0, %c0_i32 : i32, i32
  }
  func.func @transform_1(%arg0: i32, %arg1: i32) -> (i32, i32) {
    %c0_i32 = arith.constant 0 : i32
    %c0_i32_0 = arith.constant 0 : i32
    return %c0_i32, %arg1 : i32, i32
  }
  func.func @transform_2(%arg0: i32, %arg1: i32) -> (i32, i32) {
    %c0_i32 = arith.constant 0 : i32
    %c0_i32_0 = arith.constant 0 : i32
    return %c0_i32, %arg1 : i32, i32
  }
  func.func @transform_3(%arg0: i32, %arg1: i32) -> (i32, i32) {
    %c0_i32 = arith.constant 0 : i32
    return %arg0, %arg1 : i32, i32
  }
}

module attributes {stable_mosaic.version = 11 : i64} {
  func.func @_outlook_attn_kernel(%arg0: i32, %arg1: i32, %arg2: memref<1x9x128xbf16, #tpu.memory_space<vmem>>, %arg3: memref<9x8x128xbf16, #tpu.memory_space<vmem>>, %arg4: memref<1x8x128xbf16, #tpu.memory_space<vmem>>) attributes {dimension_semantics = [#tpu.dimension_semantics<parallel>, #tpu.dimension_semantics<parallel>], iteration_bounds = array<i64: 1, 9>, scalar_prefetch = 0 : i64, scratch_operands = 0 : i64, tpu.core_type = #tpu.core_type<tc>, window_params = [{transform_indices = @transform_0, window_bounds = array<i64: 1, 9, 128>}, {transform_indices = @transform_1, window_bounds = array<i64: 9, 8, 128>}, {transform_indices = @transform_2, window_bounds = array<i64: 1, 8, 128>}]} {
    %c0 = arith.constant 0 : index
    %c0_0 = arith.constant 0 : index
    %c0_1 = arith.constant 0 : index
    %0 = vector.load %arg2[%c0, %c0_0, %c0_1] : memref<1x9x128xbf16, #tpu.memory_space<vmem>>, vector<1x9x128xbf16>
    %1 = vector.shape_cast %0 : vector<1x9x128xbf16> to vector<9x128xbf16>
    %2 = arith.extf %1 : vector<9x128xbf16> to vector<9x128xf32>
    %cst = arith.constant dense<0xFF800000> : vector<128xf32>
    %3 = vector.multi_reduction <maximumf>, %2, %cst [0] : vector<9x128xf32> to vector<128xf32>
    %4 = vector.shape_cast %3 : vector<128xf32> to vector<1x128xf32>
    %5 = vector.broadcast %4 : vector<1x128xf32> to vector<9x128xf32>
    %6 = arith.subf %2, %5 : vector<9x128xf32>
    %7 = math.exp %6 : vector<9x128xf32>
    %cst_2 = arith.constant dense<0.000000e+00> : vector<128xf32>
    %8 = vector.multi_reduction <add>, %7, %cst_2 [0] : vector<9x128xf32> to vector<128xf32>
    %9 = vector.shape_cast %8 : vector<128xf32> to vector<1x128xf32>
    %10 = vector.broadcast %9 : vector<1x128xf32> to vector<9x128xf32>
    %11 = arith.divf %7, %10 : vector<9x128xf32>
    %cst_3 = arith.constant 0.000000e+00 : f32
    %12 = vector.broadcast %cst_3 : f32 to vector<8x128xf32>
    %13 = vector.extract_strided_slice %11 {offsets = [0, 0], sizes = [1, 128], strides = [1, 1]} : vector<9x128xf32> to vector<1x128xf32>
    %c0_4 = arith.constant 0 : index
    %c0_5 = arith.constant 0 : index
    %c0_6 = arith.constant 0 : index
    %14 = vector.load %arg3[%c0_4, %c0_5, %c0_6] : memref<9x8x128xbf16, #tpu.memory_space<vmem>>, vector<1x8x128xbf16>
    %15 = vector.shape_cast %14 : vector<1x8x128xbf16> to vector<8x128xbf16>
    %16 = arith.extf %15 : vector<8x128xbf16> to vector<8x128xf32>
    %17 = vector.broadcast %13 : vector<1x128xf32> to vector<8x128xf32>
    %18 = arith.mulf %17, %16 : vector<8x128xf32>
    %19 = arith.addf %12, %18 : vector<8x128xf32>
    %20 = vector.extract_strided_slice %11 {offsets = [1, 0], sizes = [1, 128], strides = [1, 1]} : vector<9x128xf32> to vector<1x128xf32>
    %c1 = arith.constant 1 : index
    %c0_7 = arith.constant 0 : index
    %c0_8 = arith.constant 0 : index
    %21 = vector.load %arg3[%c1, %c0_7, %c0_8] : memref<9x8x128xbf16, #tpu.memory_space<vmem>>, vector<1x8x128xbf16>
    %22 = vector.shape_cast %21 : vector<1x8x128xbf16> to vector<8x128xbf16>
    %23 = arith.extf %22 : vector<8x128xbf16> to vector<8x128xf32>
    %24 = vector.broadcast %20 : vector<1x128xf32> to vector<8x128xf32>
    %25 = arith.mulf %24, %23 : vector<8x128xf32>
    %26 = arith.addf %19, %25 : vector<8x128xf32>
    %27 = vector.extract_strided_slice %11 {offsets = [2, 0], sizes = [1, 128], strides = [1, 1]} : vector<9x128xf32> to vector<1x128xf32>
    %c2 = arith.constant 2 : index
    %c0_9 = arith.constant 0 : index
    %c0_10 = arith.constant 0 : index
    %28 = vector.load %arg3[%c2, %c0_9, %c0_10] : memref<9x8x128xbf16, #tpu.memory_space<vmem>>, vector<1x8x128xbf16>
    %29 = vector.shape_cast %28 : vector<1x8x128xbf16> to vector<8x128xbf16>
    %30 = arith.extf %29 : vector<8x128xbf16> to vector<8x128xf32>
    %31 = vector.broadcast %27 : vector<1x128xf32> to vector<8x128xf32>
    %32 = arith.mulf %31, %30 : vector<8x128xf32>
    %33 = arith.addf %26, %32 : vector<8x128xf32>
    %34 = vector.extract_strided_slice %11 {offsets = [3, 0], sizes = [1, 128], strides = [1, 1]} : vector<9x128xf32> to vector<1x128xf32>
    %c3 = arith.constant 3 : index
    %c0_11 = arith.constant 0 : index
    %c0_12 = arith.constant 0 : index
    %35 = vector.load %arg3[%c3, %c0_11, %c0_12] : memref<9x8x128xbf16, #tpu.memory_space<vmem>>, vector<1x8x128xbf16>
    %36 = vector.shape_cast %35 : vector<1x8x128xbf16> to vector<8x128xbf16>
    %37 = arith.extf %36 : vector<8x128xbf16> to vector<8x128xf32>
    %38 = vector.broadcast %34 : vector<1x128xf32> to vector<8x128xf32>
    %39 = arith.mulf %38, %37 : vector<8x128xf32>
    %40 = arith.addf %33, %39 : vector<8x128xf32>
    %41 = vector.extract_strided_slice %11 {offsets = [4, 0], sizes = [1, 128], strides = [1, 1]} : vector<9x128xf32> to vector<1x128xf32>
    %c4 = arith.constant 4 : index
    %c0_13 = arith.constant 0 : index
    %c0_14 = arith.constant 0 : index
    %42 = vector.load %arg3[%c4, %c0_13, %c0_14] : memref<9x8x128xbf16, #tpu.memory_space<vmem>>, vector<1x8x128xbf16>
    %43 = vector.shape_cast %42 : vector<1x8x128xbf16> to vector<8x128xbf16>
    %44 = arith.extf %43 : vector<8x128xbf16> to vector<8x128xf32>
    %45 = vector.broadcast %41 : vector<1x128xf32> to vector<8x128xf32>
    %46 = arith.mulf %45, %44 : vector<8x128xf32>
    %47 = arith.addf %40, %46 : vector<8x128xf32>
    %48 = vector.extract_strided_slice %11 {offsets = [5, 0], sizes = [1, 128], strides = [1, 1]} : vector<9x128xf32> to vector<1x128xf32>
    %c5 = arith.constant 5 : index
    %c0_15 = arith.constant 0 : index
    %c0_16 = arith.constant 0 : index
    %49 = vector.load %arg3[%c5, %c0_15, %c0_16] : memref<9x8x128xbf16, #tpu.memory_space<vmem>>, vector<1x8x128xbf16>
    %50 = vector.shape_cast %49 : vector<1x8x128xbf16> to vector<8x128xbf16>
    %51 = arith.extf %50 : vector<8x128xbf16> to vector<8x128xf32>
    %52 = vector.broadcast %48 : vector<1x128xf32> to vector<8x128xf32>
    %53 = arith.mulf %52, %51 : vector<8x128xf32>
    %54 = arith.addf %47, %53 : vector<8x128xf32>
    %55 = vector.extract_strided_slice %11 {offsets = [6, 0], sizes = [1, 128], strides = [1, 1]} : vector<9x128xf32> to vector<1x128xf32>
    %c6 = arith.constant 6 : index
    %c0_17 = arith.constant 0 : index
    %c0_18 = arith.constant 0 : index
    %56 = vector.load %arg3[%c6, %c0_17, %c0_18] : memref<9x8x128xbf16, #tpu.memory_space<vmem>>, vector<1x8x128xbf16>
    %57 = vector.shape_cast %56 : vector<1x8x128xbf16> to vector<8x128xbf16>
    %58 = arith.extf %57 : vector<8x128xbf16> to vector<8x128xf32>
    %59 = vector.broadcast %55 : vector<1x128xf32> to vector<8x128xf32>
    %60 = arith.mulf %59, %58 : vector<8x128xf32>
    %61 = arith.addf %54, %60 : vector<8x128xf32>
    %62 = vector.extract_strided_slice %11 {offsets = [7, 0], sizes = [1, 128], strides = [1, 1]} : vector<9x128xf32> to vector<1x128xf32>
    %c7 = arith.constant 7 : index
    %c0_19 = arith.constant 0 : index
    %c0_20 = arith.constant 0 : index
    %63 = vector.load %arg3[%c7, %c0_19, %c0_20] : memref<9x8x128xbf16, #tpu.memory_space<vmem>>, vector<1x8x128xbf16>
    %64 = vector.shape_cast %63 : vector<1x8x128xbf16> to vector<8x128xbf16>
    %65 = arith.extf %64 : vector<8x128xbf16> to vector<8x128xf32>
    %66 = vector.broadcast %62 : vector<1x128xf32> to vector<8x128xf32>
    %67 = arith.mulf %66, %65 : vector<8x128xf32>
    %68 = arith.addf %61, %67 : vector<8x128xf32>
    %69 = vector.extract_strided_slice %11 {offsets = [8, 0], sizes = [1, 128], strides = [1, 1]} : vector<9x128xf32> to vector<1x128xf32>
    %c8 = arith.constant 8 : index
    %c0_21 = arith.constant 0 : index
    %c0_22 = arith.constant 0 : index
    %70 = vector.load %arg3[%c8, %c0_21, %c0_22] : memref<9x8x128xbf16, #tpu.memory_space<vmem>>, vector<1x8x128xbf16>
    %71 = vector.shape_cast %70 : vector<1x8x128xbf16> to vector<8x128xbf16>
    %72 = arith.extf %71 : vector<8x128xbf16> to vector<8x128xf32>
    %73 = vector.broadcast %69 : vector<1x128xf32> to vector<8x128xf32>
    %74 = arith.mulf %73, %72 : vector<8x128xf32>
    %75 = arith.addf %68, %74 : vector<8x128xf32>
    %76 = arith.truncf %75 : vector<8x128xf32> to vector<8x128xbf16>
    %c0_23 = arith.constant 0 : index
    %c0_24 = arith.constant 0 : index
    %c0_25 = arith.constant 0 : index
    %77 = vector.load %arg4[%c0_23, %c0_24, %c0_25] : memref<1x8x128xbf16, #tpu.memory_space<vmem>>, vector<1x8x128xbf16>
    %78 = vector.shape_cast %77 : vector<1x8x128xbf16> to vector<8x128xbf16>
    %79 = vector.shape_cast %76 : vector<8x128xbf16> to vector<1x8x128xbf16>
    tpu.vector_store %arg4[%c0_23, %c0_24, %c0_25], %79 {strides = array<i32>} : memref<1x8x128xbf16, #tpu.memory_space<vmem>>, vector<1x8x128xbf16>,
    return
  }
  func.func @transform_0(%arg0: i32, %arg1: i32) -> (i32, i32, i32) {
    %c0_i32 = arith.constant 0 : i32
    %c0_i32_0 = arith.constant 0 : i32
    return %arg1, %c0_i32, %arg0 : i32, i32, i32
  }
  func.func @transform_1(%arg0: i32, %arg1: i32) -> (i32, i32, i32) {
    %c0_i32 = arith.constant 0 : i32
    %c0_i32_0 = arith.constant 0 : i32
    %c0_i32_1 = arith.constant 0 : i32
    return %c0_i32, %c0_i32_0, %arg0 : i32, i32, i32
  }
  func.func @transform_2(%arg0: i32, %arg1: i32) -> (i32, i32, i32) {
    %c0_i32 = arith.constant 0 : i32
    %c0_i32_0 = arith.constant 0 : i32
    return %arg1, %c0_i32, %arg0 : i32, i32, i32
  }
}

module attributes {stable_mosaic.version = 11 : i64} {
  func.func @kernel(%arg0: i32, %arg1: i32, %arg2: memref<128x32xf32, #tpu.memory_space<vmem>>, %arg3: memref<32x64xbf16, #tpu.memory_space<vmem>>, %arg4: memref<1x64xf32, #tpu.memory_space<vmem>>, %arg5: memref<128x64xf32, #tpu.memory_space<vmem>>, %arg6: memref<1x1x64xf32, #tpu.memory_space<vmem>>, %arg7: memref<1x1x64xf32, #tpu.memory_space<vmem>>) attributes {dimension_semantics = [#tpu.dimension_semantics<parallel>, #tpu.dimension_semantics<parallel>], iteration_bounds = array<i64: 1, 1>, scalar_prefetch = 0 : i64, scratch_operands = 0 : i64, tpu.core_type = #tpu.core_type<tc>, window_params = [{transform_indices = @transform_0, window_bounds = array<i64: 128, 32>}, {transform_indices = @transform_1, window_bounds = array<i64: 32, 64>}, {transform_indices = @transform_2, window_bounds = array<i64: 1, 64>}, {transform_indices = @transform_3, window_bounds = array<i64: 128, 64>}, {transform_indices = @transform_4, window_bounds = array<i64: 1, 1, 64>}, {transform_indices = @transform_5, window_bounds = array<i64: 1, 1, 64>}]} {
    %c0 = arith.constant 0 : index
    %c0_0 = arith.constant 0 : index
    %0 = vector.load %arg2[%c0, %c0_0] : memref<128x32xf32, #tpu.memory_space<vmem>>, vector<128x32xf32>
    %1 = arith.truncf %0 : vector<128x32xf32> to vector<128x32xbf16>
    %c0_1 = arith.constant 0 : index
    %c0_2 = arith.constant 0 : index
    %2 = vector.load %arg3[%c0_1, %c0_2] : memref<32x64xbf16, #tpu.memory_space<vmem>>, vector<32x64xbf16>
    %cst = arith.constant dense<0.000000e+00> : vector<128x64xf32>
    %3 = tpu.matmul %1, %2, %cst {dimension_numbers = #tpu.dot_dimension_numbers<[1], [0], [0], [1], [0, 0, 1, 1], [], []>} : vector<128x32xbf16>, vector<32x64xbf16>, vector<128x64xf32> -> vector<128x64xf32>
    %c0_3 = arith.constant 0 : index
    %c0_4 = arith.constant 0 : index
    %4 = vector.load %arg4[%c0_3, %c0_4] : memref<1x64xf32, #tpu.memory_space<vmem>>, vector<1x64xf32>
    %5 = vector.broadcast %4 : vector<1x64xf32> to vector<128x64xf32>
    %6 = arith.addf %3, %5 : vector<128x64xf32>
    %c0_5 = arith.constant 0 : index
    %c0_6 = arith.constant 0 : index
    %7 = vector.load %arg5[%c0_5, %c0_6] : memref<128x64xf32, #tpu.memory_space<vmem>>, vector<128x64xf32>
    tpu.vector_store %arg5[%c0_5, %c0_6], %6 {strides = array<i32>} : memref<128x64xf32, #tpu.memory_space<vmem>>, vector<128x64xf32>,
    %cst_7 = arith.constant dense<0.000000e+00> : vector<64xf32>
    %8 = vector.multi_reduction <add>, %6, %cst_7 [0] : vector<128x64xf32> to vector<64xf32>
    %9 = vector.shape_cast %8 : vector<64xf32> to vector<1x64xf32>
    %10 = vector.shape_cast %9 : vector<1x64xf32> to vector<1x1x64xf32>
    %c0_8 = arith.constant 0 : index
    %c0_9 = arith.constant 0 : index
    %c0_10 = arith.constant 0 : index
    %11 = vector.load %arg6[%c0_8, %c0_9, %c0_10] : memref<1x1x64xf32, #tpu.memory_space<vmem>>, vector<1x1x64xf32>
    tpu.vector_store %arg6[%c0_8, %c0_9, %c0_10], %10 {strides = array<i32>} : memref<1x1x64xf32, #tpu.memory_space<vmem>>, vector<1x1x64xf32>,
    %12 = arith.mulf %6, %6 : vector<128x64xf32>
    %cst_11 = arith.constant dense<0.000000e+00> : vector<64xf32>
    %13 = vector.multi_reduction <add>, %12, %cst_11 [0] : vector<128x64xf32> to vector<64xf32>
    %14 = vector.shape_cast %13 : vector<64xf32> to vector<1x64xf32>
    %15 = vector.shape_cast %14 : vector<1x64xf32> to vector<1x1x64xf32>
    %c0_12 = arith.constant 0 : index
    %c0_13 = arith.constant 0 : index
    %c0_14 = arith.constant 0 : index
    %16 = vector.load %arg7[%c0_12, %c0_13, %c0_14] : memref<1x1x64xf32, #tpu.memory_space<vmem>>, vector<1x1x64xf32>
    tpu.vector_store %arg7[%c0_12, %c0_13, %c0_14], %15 {strides = array<i32>} : memref<1x1x64xf32, #tpu.memory_space<vmem>>, vector<1x1x64xf32>,
    return
  }
  func.func @transform_0(%arg0: i32, %arg1: i32) -> (i32, i32) {
    %c0_i32 = arith.constant 0 : i32
    %c0_i32_0 = arith.constant 0 : i32
    return %arg0, %c0_i32 : i32, i32
  }
  func.func @transform_1(%arg0: i32, %arg1: i32) -> (i32, i32) {
    %c0_i32 = arith.constant 0 : i32
    %c0_i32_0 = arith.constant 0 : i32
    return %c0_i32, %arg1 : i32, i32
  }
  func.func @transform_2(%arg0: i32, %arg1: i32) -> (i32, i32) {
    %c0_i32 = arith.constant 0 : i32
    %c0_i32_0 = arith.constant 0 : i32
    return %c0_i32, %arg1 : i32, i32
  }
  func.func @transform_3(%arg0: i32, %arg1: i32) -> (i32, i32) {
    %c0_i32 = arith.constant 0 : i32
    return %arg0, %arg1 : i32, i32
  }
  func.func @transform_4(%arg0: i32, %arg1: i32) -> (i32, i32, i32) {
    %c0_i32 = arith.constant 0 : i32
    %c0_i32_0 = arith.constant 0 : i32
    return %arg0, %c0_i32, %arg1 : i32, i32, i32
  }
  func.func @transform_5(%arg0: i32, %arg1: i32) -> (i32, i32, i32) {
    %c0_i32 = arith.constant 0 : i32
    %c0_i32_0 = arith.constant 0 : i32
    return %arg0, %c0_i32, %arg1 : i32, i32, i32
  }
}

module attributes {stable_mosaic.version = 11 : i64} {
  func.func @kernel(%arg0: i32, %arg1: i32, %arg2: memref<128x32xbf16, #tpu.memory_space<vmem>>, %arg3: memref<32x32xbf16, #tpu.memory_space<vmem>>, %arg4: memref<1x32xf32, #tpu.memory_space<vmem>>, %arg5: memref<128x32xf32, #tpu.memory_space<vmem>>, %arg6: memref<128x32xf32, #tpu.memory_space<vmem>>, %arg7: memref<1x1x32xf32, #tpu.memory_space<vmem>>, %arg8: memref<1x1x32xf32, #tpu.memory_space<vmem>>) attributes {dimension_semantics = [#tpu.dimension_semantics<parallel>, #tpu.dimension_semantics<parallel>], iteration_bounds = array<i64: 1, 1>, scalar_prefetch = 0 : i64, scratch_operands = 0 : i64, tpu.core_type = #tpu.core_type<tc>, window_params = [{transform_indices = @transform_0, window_bounds = array<i64: 128, 32>}, {transform_indices = @transform_1, window_bounds = array<i64: 32, 32>}, {transform_indices = @transform_2, window_bounds = array<i64: 1, 32>}, {transform_indices = @transform_3, window_bounds = array<i64: 128, 32>}, {transform_indices = @transform_4, window_bounds = array<i64: 128, 32>}, {transform_indices = @transform_5, window_bounds = array<i64: 1, 1, 32>}, {transform_indices = @transform_6, window_bounds = array<i64: 1, 1, 32>}]} {
    %c0 = arith.constant 0 : index
    %c0_0 = arith.constant 0 : index
    %0 = vector.load %arg2[%c0, %c0_0] : memref<128x32xbf16, #tpu.memory_space<vmem>>, vector<128x32xbf16>
    %c0_1 = arith.constant 0 : index
    %c0_2 = arith.constant 0 : index
    %1 = vector.load %arg3[%c0_1, %c0_2] : memref<32x32xbf16, #tpu.memory_space<vmem>>, vector<32x32xbf16>
    %cst = arith.constant dense<0.000000e+00> : vector<128x32xf32>
    %2 = tpu.matmul %0, %1, %cst {dimension_numbers = #tpu.dot_dimension_numbers<[1], [0], [0], [1], [0, 0, 1, 1], [], []>} : vector<128x32xbf16>, vector<32x32xbf16>, vector<128x32xf32> -> vector<128x32xf32>
    %c0_3 = arith.constant 0 : index
    %c0_4 = arith.constant 0 : index
    %3 = vector.load %arg4[%c0_3, %c0_4] : memref<1x32xf32, #tpu.memory_space<vmem>>, vector<1x32xf32>
    %4 = vector.broadcast %3 : vector<1x32xf32> to vector<128x32xf32>
    %5 = arith.addf %2, %4 : vector<128x32xf32>
    %c0_5 = arith.constant 0 : index
    %c0_6 = arith.constant 0 : index
    %6 = vector.load %arg5[%c0_5, %c0_6] : memref<128x32xf32, #tpu.memory_space<vmem>>, vector<128x32xf32>
    %7 = arith.addf %5, %6 : vector<128x32xf32>
    %c0_7 = arith.constant 0 : index
    %c0_8 = arith.constant 0 : index
    %8 = vector.load %arg6[%c0_7, %c0_8] : memref<128x32xf32, #tpu.memory_space<vmem>>, vector<128x32xf32>
    tpu.vector_store %arg6[%c0_7, %c0_8], %7 {strides = array<i32>} : memref<128x32xf32, #tpu.memory_space<vmem>>, vector<128x32xf32>,
    %cst_9 = arith.constant dense<0.000000e+00> : vector<32xf32>
    %9 = vector.multi_reduction <add>, %7, %cst_9 [0] : vector<128x32xf32> to vector<32xf32>
    %10 = vector.shape_cast %9 : vector<32xf32> to vector<1x32xf32>
    %11 = vector.shape_cast %10 : vector<1x32xf32> to vector<1x1x32xf32>
    %c0_10 = arith.constant 0 : index
    %c0_11 = arith.constant 0 : index
    %c0_12 = arith.constant 0 : index
    %12 = vector.load %arg7[%c0_10, %c0_11, %c0_12] : memref<1x1x32xf32, #tpu.memory_space<vmem>>, vector<1x1x32xf32>
    tpu.vector_store %arg7[%c0_10, %c0_11, %c0_12], %11 {strides = array<i32>} : memref<1x1x32xf32, #tpu.memory_space<vmem>>, vector<1x1x32xf32>,
    %13 = arith.mulf %7, %7 : vector<128x32xf32>
    %cst_13 = arith.constant dense<0.000000e+00> : vector<32xf32>
    %14 = vector.multi_reduction <add>, %13, %cst_13 [0] : vector<128x32xf32> to vector<32xf32>
    %15 = vector.shape_cast %14 : vector<32xf32> to vector<1x32xf32>
    %16 = vector.shape_cast %15 : vector<1x32xf32> to vector<1x1x32xf32>
    %c0_14 = arith.constant 0 : index
    %c0_15 = arith.constant 0 : index
    %c0_16 = arith.constant 0 : index
    %17 = vector.load %arg8[%c0_14, %c0_15, %c0_16] : memref<1x1x32xf32, #tpu.memory_space<vmem>>, vector<1x1x32xf32>
    tpu.vector_store %arg8[%c0_14, %c0_15, %c0_16], %16 {strides = array<i32>} : memref<1x1x32xf32, #tpu.memory_space<vmem>>, vector<1x1x32xf32>,
    return
  }
  func.func @transform_0(%arg0: i32, %arg1: i32) -> (i32, i32) {
    %c0_i32 = arith.constant 0 : i32
    %c0_i32_0 = arith.constant 0 : i32
    return %arg0, %c0_i32 : i32, i32
  }
  func.func @transform_1(%arg0: i32, %arg1: i32) -> (i32, i32) {
    %c0_i32 = arith.constant 0 : i32
    %c0_i32_0 = arith.constant 0 : i32
    return %c0_i32, %arg1 : i32, i32
  }
  func.func @transform_2(%arg0: i32, %arg1: i32) -> (i32, i32) {
    %c0_i32 = arith.constant 0 : i32
    %c0_i32_0 = arith.constant 0 : i32
    return %c0_i32, %arg1 : i32, i32
  }
  func.func @transform_3(%arg0: i32, %arg1: i32) -> (i32, i32) {
    %c0_i32 = arith.constant 0 : i32
    return %arg0, %arg1 : i32, i32
  }
  func.func @transform_4(%arg0: i32, %arg1: i32) -> (i32, i32) {
    %c0_i32 = arith.constant 0 : i32
    return %arg0, %arg1 : i32, i32
  }
  func.func @transform_5(%arg0: i32, %arg1: i32) -> (i32, i32, i32) {
    %c0_i32 = arith.constant 0 : i32
    %c0_i32_0 = arith.constant 0 : i32
    return %arg0, %c0_i32, %arg1 : i32, i32, i32
  }
  func.func @transform_6(%arg0: i32, %arg1: i32) -> (i32, i32, i32) {
    %c0_i32 = arith.constant 0 : i32
    %c0_i32_0 = arith.constant 0 : i32
    return %arg0, %c0_i32, %arg1 : i32, i32, i32
  }
}

module attributes {stable_mosaic.version = 11 : i64} {
  func.func @kernel(%arg0: i32, %arg1: i32, %arg2: memref<128x64xbf16, #tpu.memory_space<vmem>>, %arg3: memref<64x32xbf16, #tpu.memory_space<vmem>>, %arg4: memref<1x32xf32, #tpu.memory_space<vmem>>, %arg5: memref<128x32xf32, #tpu.memory_space<vmem>>, %arg6: memref<128x32xf32, #tpu.memory_space<vmem>>) attributes {dimension_semantics = [#tpu.dimension_semantics<parallel>, #tpu.dimension_semantics<parallel>], iteration_bounds = array<i64: 1, 1>, scalar_prefetch = 0 : i64, scratch_operands = 0 : i64, tpu.core_type = #tpu.core_type<tc>, window_params = [{transform_indices = @transform_0, window_bounds = array<i64: 128, 64>}, {transform_indices = @transform_1, window_bounds = array<i64: 64, 32>}, {transform_indices = @transform_2, window_bounds = array<i64: 1, 32>}, {transform_indices = @transform_3, window_bounds = array<i64: 128, 32>}, {transform_indices = @transform_4, window_bounds = array<i64: 128, 32>}]} {
    %c0 = arith.constant 0 : index
    %c0_0 = arith.constant 0 : index
    %0 = vector.load %arg2[%c0, %c0_0] : memref<128x64xbf16, #tpu.memory_space<vmem>>, vector<128x64xbf16>
    %c0_1 = arith.constant 0 : index
    %c0_2 = arith.constant 0 : index
    %1 = vector.load %arg3[%c0_1, %c0_2] : memref<64x32xbf16, #tpu.memory_space<vmem>>, vector<64x32xbf16>
    %cst = arith.constant dense<0.000000e+00> : vector<128x32xf32>
    %2 = tpu.matmul %0, %1, %cst {dimension_numbers = #tpu.dot_dimension_numbers<[1], [0], [0], [1], [0, 0, 1, 1], [], []>} : vector<128x64xbf16>, vector<64x32xbf16>, vector<128x32xf32> -> vector<128x32xf32>
    %c0_3 = arith.constant 0 : index
    %c0_4 = arith.constant 0 : index
    %3 = vector.load %arg4[%c0_3, %c0_4] : memref<1x32xf32, #tpu.memory_space<vmem>>, vector<1x32xf32>
    %4 = vector.broadcast %3 : vector<1x32xf32> to vector<128x32xf32>
    %5 = arith.addf %2, %4 : vector<128x32xf32>
    %c0_5 = arith.constant 0 : index
    %c0_6 = arith.constant 0 : index
    %6 = vector.load %arg5[%c0_5, %c0_6] : memref<128x32xf32, #tpu.memory_space<vmem>>, vector<128x32xf32>
    %7 = arith.addf %5, %6 : vector<128x32xf32>
    %c0_7 = arith.constant 0 : index
    %c0_8 = arith.constant 0 : index
    %8 = vector.load %arg6[%c0_7, %c0_8] : memref<128x32xf32, #tpu.memory_space<vmem>>, vector<128x32xf32>
    tpu.vector_store %arg6[%c0_7, %c0_8], %7 {strides = array<i32>} : memref<128x32xf32, #tpu.memory_space<vmem>>, vector<128x32xf32>,
    return
  }
  func.func @transform_0(%arg0: i32, %arg1: i32) -> (i32, i32) {
    %c0_i32 = arith.constant 0 : i32
    %c0_i32_0 = arith.constant 0 : i32
    return %arg0, %c0_i32 : i32, i32
  }
  func.func @transform_1(%arg0: i32, %arg1: i32) -> (i32, i32) {
    %c0_i32 = arith.constant 0 : i32
    %c0_i32_0 = arith.constant 0 : i32
    return %c0_i32, %arg1 : i32, i32
  }
  func.func @transform_2(%arg0: i32, %arg1: i32) -> (i32, i32) {
    %c0_i32 = arith.constant 0 : i32
    %c0_i32_0 = arith.constant 0 : i32
    return %c0_i32, %arg1 : i32, i32
  }
  func.func @transform_3(%arg0: i32, %arg1: i32) -> (i32, i32) {
    %c0_i32 = arith.constant 0 : i32
    return %arg0, %arg1 : i32, i32
  }
  func.func @transform_4(%arg0: i32, %arg1: i32) -> (i32, i32) {
    %c0_i32 = arith.constant 0 : i32
    return %arg0, %arg1 : i32, i32
  }
}

</mosaic_0001>

<bundles_post_ra>
// kernel: outlooker_forward.6
= control target key start
LH: loop header
LB: loop body
LE: loop exit
PB: predicated region body
PF: predicated region fallthrough
CT: control target
= control target key end

     0   :  { %vm62_vm0 = vcmask 261120   ;;  %vm248_vm1 = vcmask 257024   ;;  %s497_s1 = inlined_call_operand.vmem [shape: bf16[32,32], index: 1, kind: input, shape index: {}]   ;;  %s498_s0 = inlined_call_operand.vmem [shape: f32[128,32], index: 0, kind: input, shape index: {}]   ;;  %s499_s2 = inlined_call_operand.vmem [shape: f32[1,32], index: 2, kind: input, shape index: {}]   ;;  %s500_s3 = inlined_call_operand.vmem [shape: bf16[128,32], index: 3, kind: output, shape index: {}]  }
   0x1   :  { %v346_v0 = vld [vmem:[%s497_s1] sm:$0xff]   ;;  %v347_v1 = vld [vmem:[%s497_s1 + $0x8] sm:$0xff]   ;;  %v17_v7 = vld [vmem:[%s498_s0 + $0x10] sm:$0xff] }
   0x2   :  { %322 = vmatprep.subr.bf16.mxu0 %v346_v0  ;;  %342 = vmatprep.subr.bf16.mxu1 %v346_v0  ;;  %v15_v2 = vld [vmem:[%s498_s0] sm:$0xff]  ;;  %v16_v3 = vld [vmem:[%s498_s0 + $0x8] sm:$0xff]  ;;  %v18_v8 = vld [vmem:[%s498_s0 + $0x18] sm:$0xff] }
   0x3   :  { %v23_v4 = vld [vmem:[%s498_s0 + $0x40] sm:$0xff]  ;;  %323 = vmatpush3.bf16.msra.mxu0 %v346_v0  ;;  %344 = vmatpush3.bf16.msra.mxu1 %v346_v0  ;;  %v31_v5 = vpack.c.bf16 %v16_v3, %v15_v2  ;;  %v24_v6 = vld [vmem:[%s498_s0 + $0x48] sm:$0xff]  ;;  %v25_v10 = vld [vmem:[%s498_s0 + $0x50] sm:$0xff]  ;;  %v32_v16 = vpack.c.bf16 %v18_v8, %v17_v7 }
   0x4   :  { %324 = vmatprep.subr.bf16.mxu0 %v347_v1  ;;  %343 = vmatprep.subr.bf16.mxu1 %v347_v1  ;;  %v35_v9 = vpack.c.bf16 %v24_v6, %v23_v4  ;;  %v26_v11 = vld [vmem:[%s498_s0 + $0x58] sm:$0xff]  ;;  %v19_v12 = vld [vmem:[%s498_s0 + $0x20] sm:$0xff]  ;;  %v20_v13 = vld [vmem:[%s498_s0 + $0x28] sm:$0xff] }
   0x5   :  { %326 = vmatprep.mubr.msk.bf16.mxu0 %vm62_vm0, %v31_v5  ;;  %v27_v14 = vld [vmem:[%s498_s0 + $0x60] sm:$0xff]  ;;  %v28_v15 = vld [vmem:[%s498_s0 + $0x68] sm:$0xff]  ;;  %v36_v17 = vpack.c.bf16 %v26_v11, %v25_v10  ;;  %v33_v18 = vpack.c.bf16 %v20_v13, %v19_v12  ;;  %v21_v20 = vld [vmem:[%s498_s0 + $0x30] sm:$0xff] }
   0x6   :  { %334 = vmatprep.mubr.msk.bf16.mxu1 %vm62_vm0, %v35_v9  ;;  %v37_v19 = vpack.c.bf16 %v28_v15, %v27_v14  ;;  %v22_v21 = vld [vmem:[%s498_s0 + $0x38] sm:$0xff]  ;;  %v29_v22 = vld [vmem:[%s498_s0 + $0x70] sm:$0xff]  ;;  %v269_v26 = vld [vmem:[%s499_s2] ss:$0 sm:$0xff] }
   0x7   :  { %325 = vmatpush3.bf16.msra.mxu0 %v347_v1  ;;  %345 = vmatpush3.bf16.msra.mxu1 %v347_v1  ;;  %v30_v23 = vld [vmem:[%s498_s0 + $0x78] sm:$0xff]  ;;  %v34_v24 = vpack.c.bf16 %v22_v21, %v21_v20 }
   0x8   :  { %v38_v25 = vpack.c.bf16 %v30_v23, %v29_v22 }
   0xa   :  { %327 = vmatmul.mubr.msk.bf16.vlgmr.msra.gmra.mrb[0].mxu0 %vm62_vm0, %v32_v16  ;;  %335 = vmatmul.mubr.msk.bf16.vlgmr.msra.gmra.mrb[0].mxu1 %vm62_vm0, %v36_v17 }
   0xb   :  { %330 = vmatprep.mubr.msk.bf16.mxu0 %vm62_vm0, %v33_v18  ;;  %338 = vmatprep.mubr.msk.bf16.mxu1 %vm62_vm0, %v37_v19 }
  0x12   :  { %331 = vmatmul.mubr.msk.bf16.gmra.mrb[4].mxu0 %vm62_vm0, %v34_v24  ;;  %339 = vmatmul.mubr.msk.bf16.gmra.mrb[4].mxu1 %vm62_vm0, %v38_v25 }
  0xdd   :  { %v328_v27 = vpop.f32.mrb[0].mxu0  ;;  %v336_v28 = vpop.f32.mrb[0].mxu1 }
  0xde   :  { %v130_v29 = vadd.f32 %v328_v27, %v269_v26  ;;  %v162_v30 = vadd.f32 %v336_v28, %v269_v26  ;;  %v121_v31 = vpop.f32.mrb[1].mxu0  ;;  %v153_v32 = vpop.f32.mrb[1].mxu1 }
  0xdf   :  { %v122_v33 = vadd.f32 %v269_v26, %v121_v31  ;;  %v154_v34 = vadd.f32 %v269_v26, %v153_v32  ;;  %v329_v35 = vpop.f32.mrb[2].mxu0  ;;  %v337_v36 = vpop.f32.mrb[2].mxu1 }
  0xe0   :  { %v298_v37 = vpack.c.bf16 %v130_v29, %v130_v29  ;;  %v306_v38 = vpack.c.bf16 %v162_v30, %v162_v30  ;;  %v133_v39 = vadd.f32 %v329_v35, %v269_v26  ;;  %v165_v40 = vadd.f32 %v337_v36, %v269_v26  ;;  %v124_v41 = vpop.f32.mrb[3].mxu0  ;;  %v156_v42 = vpop.f32.mrb[3].mxu1 }
  0xe1   :  { %v296_v43 = vpack.c.bf16 %v122_v33, %v122_v33  ;;  %v304_v44 = vpack.c.bf16 %v154_v34, %v154_v34  ;;  %v125_v45 = vadd.f32 %v269_v26, %v124_v41  ;;  %v157_v46 = vadd.f32 %v269_v26, %v156_v42 }
  0xe2   :  { %251 = vst.msk [vmem:[%s500_s3 + $0x8] sm:$0xf] %vm248_vm1, %v298_v37  ;;  %259 = vst.msk [vmem:[%s500_s3 + $0x28] sm:$0xf] %vm248_vm1, %v306_v38  ;;  %v299_v47 = vpack.c.bf16 %v133_v39, %v133_v39  ;;  %v307_v48 = vpack.c.bf16 %v165_v40, %v165_v40 }
  0xe3   :  { %249 = vst.msk [vmem:[%s500_s3] sm:$0xf] %vm248_vm1, %v296_v43  ;;  %257 = vst.msk [vmem:[%s500_s3 + $0x20] sm:$0xf] %vm248_vm1, %v304_v44  ;;  %v297_v49 = vpack.c.bf16 %v125_v45, %v125_v45  ;;  %v305_v50 = vpack.c.bf16 %v157_v46, %v157_v46 }
  0xe4   :  { %252 = vst.msk [vmem:[%s500_s3 + $0xc] sm:$0xf] %vm248_vm1, %v299_v47  ;;  %260 = vst.msk [vmem:[%s500_s3 + $0x2c] sm:$0xf] %vm248_vm1, %v307_v48 }
  0xe5   :  { %250 = vst.msk [vmem:[%s500_s3 + $0x4] sm:$0xf] %vm248_vm1, %v297_v49  ;;  %258 = vst.msk [vmem:[%s500_s3 + $0x24] sm:$0xf] %vm248_vm1, %v305_v50  ;;  %v332_v51 = vpop.f32.mrb[4].mxu0  ;;  %v340_v52 = vpop.f32.mrb[4].mxu1 }
  0xe6   :  { %v146_v53 = vadd.f32 %v332_v51, %v269_v26  ;;  %v178_v54 = vadd.f32 %v340_v52, %v269_v26  ;;  %v137_v55 = vpop.f32.mrb[5].mxu0  ;;  %v169_v56 = vpop.f32.mrb[5].mxu1 }
  0xe7   :  { %v138_v57 = vadd.f32 %v269_v26, %v137_v55  ;;  %v170_v58 = vadd.f32 %v269_v26, %v169_v56  ;;  %v333_v59 = vpop.f32.mrb[6].mxu0  ;;  %v341_v60 = vpop.f32.mrb[6].mxu1 }
  0xe8   :  { %v302_v61 = vpack.c.bf16 %v146_v53, %v146_v53  ;;  %v310_v62 = vpack.c.bf16 %v178_v54, %v178_v54  ;;  %v149_v63 = vadd.f32 %v333_v59, %v269_v26  ;;  %v181_v0 = vadd.f32 %v341_v60, %v269_v26  ;;  %v140_v1 = vpop.f32.mrb[7].mxu0  ;;  %v172_v2 = vpop.f32.mrb[7].mxu1 }
  0xe9   :  { %v300_v3 = vpack.c.bf16 %v138_v57, %v138_v57  ;;  %v308_v4 = vpack.c.bf16 %v170_v58, %v170_v58  ;;  %v141_v5 = vadd.f32 %v269_v26, %v140_v1  ;;  %v173_v6 = vadd.f32 %v269_v26, %v172_v2 }
  0xea   :  { %255 = vst.msk [vmem:[%s500_s3 + $0x18] sm:$0xf] %vm248_vm1, %v302_v61  ;;  %263 = vst.msk [vmem:[%s500_s3 + $0x38] sm:$0xf] %vm248_vm1, %v310_v62  ;;  %v303_v7 = vpack.c.bf16 %v149_v63, %v149_v63  ;;  %v311_v8 = vpack.c.bf16 %v181_v0, %v181_v0 }
  0xeb   :  { %253 = vst.msk [vmem:[%s500_s3 + $0x10] sm:$0xf] %vm248_vm1, %v300_v3  ;;  %261 = vst.msk [vmem:[%s500_s3 + $0x30] sm:$0xf] %vm248_vm1, %v308_v4  ;;  %v301_v9 = vpack.c.bf16 %v141_v5, %v141_v5  ;;  %v309_v10 = vpack.c.bf16 %v173_v6, %v173_v6 }
  0xec   :  { %256 = vst.msk [vmem:[%s500_s3 + $0x1c] sm:$0xf] %vm248_vm1, %v303_v7  ;;  %264 = vst.msk [vmem:[%s500_s3 + $0x3c] sm:$0xf] %vm248_vm1, %v311_v8 }
  0xed   :  { %254 = vst.msk [vmem:[%s500_s3 + $0x14] sm:$0xf] %vm248_vm1, %v301_v9  ;;  %262 = vst.msk [vmem:[%s500_s3 + $0x34] sm:$0xf] %vm248_vm1, %v309_v10 }

// kernel: outlooker_forward.7
= control target key start
LH: loop header
LB: loop body
LE: loop exit
PB: predicated region body
PF: predicated region fallthrough
CT: control target
= control target key end

     0   :  { %v287_v1 = vmov 0   ;;  %vm78_vm0 = vcmask 261120   ;;  %v31_v13 = vlaneseq  ;;  %vm228_vm1 = vcmask 551936   ;;  %s369_s1 = inlined_call_operand.vmem [shape: bf16[32,324], index: 1, kind: input, shape index: {}]   ;;  %s370_s0 = inlined_call_operand.vmem [shape: f32[32,32], index: 0, kind: input, shape index: {}]   ;;  %s371_s2 = inlined_call_operand.vmem [shape: f32[1,324], index: 2, kind: input, shape index: {}]   ;;  %s372_s3 = inlined_call_operand.vmem [shape: bf16[32,324], index: 3, kind: output, shape index: {}]  }
   0x1   :  { %v279_v0 = vld [vmem:[%s369_s1 + $0x4] ss:$12 sps:$4 sm:$0xff]   ;;  %117 = vmatprep.mubr.bf16.mxu0 %v287_v1  ;;  %v281_v2 = vld [vmem:[%s369_s1] ss:$12 sps:$4 sm:$0xff]   ;;  %v282_v3 = vld [vmem:[%s369_s1 + $0x1c] ss:$12 sps:$4 sm:$0xff]  }
   0x2   :  { %85 = vmatprep.subr.bf16.mxu0 %v279_v0  ;;  %v284_v4 = vld [vmem:[%s369_s1 + $0x18] ss:$12 sps:$4 sm:$0xff]   ;;  %v285_v5 = vld [vmem:[%s369_s1 + $0x8] ss:$12 sps:$4 sm:$0xff]   ;;  %v286_v8 = vld [vmem:[%s369_s1 + $0x20] ss:$12 sps:$4 sm:$0xff]  }
   0x3   :  { %86 = vmatpush1.bf16.msra.mxu0 %v281_v2  ;;  %v15_v6 = vld [vmem:[%s370_s0] sm:$0xff]  ;;  %v16_v7 = vld [vmem:[%s370_s0 + $0x8] sm:$0xff]  ;;  %270 = vmatprep.subr.bf16.mxu1 %v285_v5  ;;  %v17_v10 = vld [vmem:[%s370_s0 + $0x10] sm:$0xff]  ;;  %v32_v14 = vshrl.u32 %v31_v13, 7 }
   0x4   :  { %87 = vmatprep.subr.bf16.mxu0 %v282_v3  ;;  %271 = vmatpush3.bf16.msra.mxu1 %v285_v5  ;;  %v19_v9 = vpack.c.bf16 %v16_v7, %v15_v6  ;;  %v18_v11 = vld [vmem:[%s370_s0 + $0x18] sm:$0xff]  ;;  %v29_v16 = vld [vmem:[%s371_s2] sm:$0x7] }
   0x5   :  { %272 = vmatprep.subr.bf16.mxu1 %v286_v8  ;;  %v20_v12 = vpack.c.bf16 %v18_v11, %v17_v10  ;;  %v33_v15 = vsub.s32 0, %v32_v14  ;;  %v37_v17 = vsub.s32 1, %v32_v14  ;;  %v41_v18 = vsub.s32 2, %v32_v14 }
   0x6   :  { %274 = vmatprep.mubr.msk.bf16.mxu1 %vm78_vm0, %v19_v9 }
   0x7   :  { %88 = vmatpush1.bf16.msra.mxu0 %v284_v4  ;;  %v34_v19 = vrot.slane %v29_v16, %v33_v15  ;;  %v38_v20 = vrot.slane %v29_v16, %v37_v17  ;;  %v42_v22 = vrot.slane %v29_v16, %v41_v18 }
   0x8   :  { %273 = vmatpush3.bf16.msra.mxu1 %v286_v8 }
   0xa   :  { %246 = vmatmul.mubr.msk.bf16.vlgmr.msra.gmra.mrb[0].mxu0 %vm78_vm0, %v19_v9 }
   0xb   :  { %127 = vmatprep.mubr.bf16.mxu0 %v287_v1  ;;  %275 = vmatmul.mubr.msk.bf16.vlgmr.msra.gmra.mrb[0].mxu1 %vm78_vm0, %v20_v12 }
  0x12   :  { %247 = vmatmul.mubr.msk.bf16.gmra.mrb[4].mxu0 %vm78_vm0, %v20_v12 }
  0xdd   :  { %v119_v21 = vpop.f32.mrb[0].mxu0 }
  0xde   :  { %v120_v23 = vadd.f32 %v119_v21, %v34_v19  ;;  %v121_v24 = vpop.f32.mrb[1].mxu0  ;;  %v276_v29 = vpop.f32.mrb[0].mxu1 }
  0xdf   :  { %v122_v25 = vadd.f32 %v121_v24, %v38_v20  ;;  %v123_v26 = vpop.f32.mrb[2].mxu0  ;;  %v181_v32 = vadd.f32 %v276_v29, %v42_v22  ;;  %v172_v33 = vpop.f32.mrb[1].mxu1 }
  0xe0   :  { %v124_v27 = vadd.f32 %v123_v26, %v34_v19  ;;  %v125_v28 = vpop.f32.mrb[3].mxu0  ;;  %v173_v34 = vadd.f32 %v172_v33, %v42_v22  ;;  %v277_v35 = vpop.f32.mrb[2].mxu1 }
  0xe1   :  { %v258_v30 = vpack.c.bf16 %v122_v25, %v120_v23  ;;  %v126_v31 = vadd.f32 %v125_v28, %v38_v20  ;;  %v263_v37 = vpack.c.bf16 %v181_v32, %v181_v32  ;;  %v184_v38 = vadd.f32 %v277_v35, %v42_v22  ;;  %v175_v39 = vpop.f32.mrb[3].mxu1 }
  0xe2   :  { %v259_v40 = vpack.c.bf16 %v173_v34, %v173_v34  ;;  %v176_v41 = vadd.f32 %v175_v39, %v42_v22 }
  0xe3   :  { %227 = vst [vmem:[%s372_s3] sm:$0xff] %v258_v30  ;;  %v260_v36 = vpack.c.bf16 %v126_v31, %v124_v27  ;;  %233 = vst.msk [vmem:[%s372_s3 + $0x20] sm:$0xf] %vm228_vm1, %v263_v37  ;;  %v265_v42 = vpack.c.bf16 %v184_v38, %v184_v38 }
  0xe4   :  { %229 = vst.msk [vmem:[%s372_s3 + $0x8] sm:$0xf] %vm228_vm1, %v259_v40  ;;  %v261_v45 = vpack.c.bf16 %v176_v41, %v176_v41 }
  0xe5   :  { %230 = vst [vmem:[%s372_s3 + $0xc] sm:$0xff] %v260_v36  ;;  %v129_v43 = vpop.f32.mrb[4].mxu0  ;;  %235 = vst.msk [vmem:[%s372_s3 + $0x2c] sm:$0xf] %vm228_vm1, %v265_v42 }
  0xe6   :  { %v130_v44 = vadd.f32 %v129_v43, %v34_v19  ;;  %v131_v46 = vpop.f32.mrb[5].mxu0  ;;  %231 = vst.msk [vmem:[%s372_s3 + $0x14] sm:$0xf] %vm228_vm1, %v261_v45 }
  0xe7   :  { %v132_v47 = vadd.f32 %v131_v46, %v38_v20  ;;  %v133_v48 = vpop.f32.mrb[6].mxu0 }
  0xe8   :  { %v134_v49 = vadd.f32 %v133_v48, %v34_v19  ;;  %v135_v50 = vpop.f32.mrb[7].mxu0 }
  0xe9   :  { %v262_v51 = vpack.c.bf16 %v132_v47, %v130_v44  ;;  %v136_v52 = vadd.f32 %v135_v50, %v38_v20 }
  0xeb   :  { %232 = vst [vmem:[%s372_s3 + $0x18] sm:$0xff] %v262_v51  ;;  %v264_v53 = vpack.c.bf16 %v136_v52, %v134_v49 }
  0xed   :  { %234 = vst [vmem:[%s372_s3 + $0x24] sm:$0xff] %v264_v53 }

// kernel: outlooker_forward.8
= control target key start
LH: loop header
LB: loop body
LE: loop exit
PB: predicated region body
PF: predicated region fallthrough
CT: control target
= control target key end

     0   :  { %s484_s9 = smov 0   ;;  %s486_s10 = smov 0   ;;  %s538_s0 = inlined_call_operand.vmem [shape: bf16[9,9,128], index: 0, kind: input, shape index: {}]   ;;  %s539_s1 = inlined_call_operand.vmem [shape: bf16[9,8,128], index: 1, kind: input, shape index: {}]   ;;  %s540_s2 = inlined_call_operand.vmem [shape: bf16[9,8,128], index: 2, kind: output, shape index: {}]  }
   0x1   :  { %s488_s11 = smov 0  }
   0x2 LB: > { %s21_s12 = sadd.s32 1, %s463_s10  ;;  %p400_p0 = scmp.ge.s32.totalorder %s467_s11, 1  ;;  %s467_s11 = sphi %s488_s11, %s12_s11   ;;  %s463_s10 = sphi %s486_s10, %s542_s10   ;;  %s459_s9 = sphi %s484_s9, %s541_s9  }
   0x3   : > { %p22_p1 = scmp.ge.s32.totalorder %s21_s12, 9  ;;  %p140_p2 = scmp.lt.s32.totalorder %s467_s11, 10 }
   0x5   : > { %s544_s12 = smov (%p22_p1, %s21_s12), 0  ;;  %p141_p3 = pnand %p400_p0, %p140_p2 }
   0x6   : > { %p171_p4 = scmp.lt.s32.totalorder (!%p141_p3), %s459_s9, 8  ;;  %vm194_vm0 = vcmask (!%p141_p3), 1040384   ;;  %v222_v26 = vlaneseq (!%p141_p3)  ;;  %v220_v28 = vld [vmem:[%s539_s1] sm:$0xff] (!%p141_p3)   ;;  %v405_v29 = vld [vmem:[%s539_s1 + $0x8] sm:$0xff] (!%p141_p3)   ;;  %v407_v39 = vld [vmem:[%s539_s1 + $0x10] sm:$0xff] (!%p141_p3)  }
   0x7   : > { %144 = sbr.rel (%p141_p3) target bundleno = 102 (0x66), region = 28  ;;  %v221_v35 = vunpack.c.l.bf16 (!%p141_p3), %v220_v28  ;;  %v230_v37 = vunpack.c.h.bf16 (!%p141_p3), %v220_v28  ;;  %v239_v38 = vunpack.c.l.bf16 (!%p141_p3), %v405_v29  ;;  %v248_v41 = vunpack.c.h.bf16 (!%p141_p3), %v405_v29  ;;  %v409_v53 = vld [vmem:[%s539_s1 + $0x18] sm:$0xff] (!%p141_p3)  }
   0x8   : > { %v223_v27 = vshrl.u32 (!%p141_p3), %v222_v26, 7  ;;  %v257_v47 = vunpack.c.l.bf16 (!%p141_p3), %v407_v39  ;;  %v266_v54 = vunpack.c.h.bf16 (!%p141_p3), %v407_v39  ;;  %v275_v59 = vunpack.c.l.bf16 (!%p141_p3), %v409_v53 }
   0xa   : > { %v224_v30 = vsub.s32 (!%p141_p3), 0, %v223_v27  ;;  %v233_v31 = vsub.s32 (!%p141_p3), 1, %v223_v27  ;;  %v242_v32 = vsub.s32 (!%p141_p3), 2, %v223_v27  ;;  %v251_v33 = vsub.s32 (!%p141_p3), 3, %v223_v27 }
   0xb   : > { %v260_v40 = vsub.s32 (!%p141_p3), 4, %v223_v27  ;;  %v269_v42 = vsub.s32 (!%p141_p3), 5, %v223_v27  ;;  %v278_v48 = vsub.s32 (!%p141_p3), 6, %v223_v27  ;;  %v287_v58 = vsub.s32 (!%p141_p3), 7, %v223_v27 }
   0xe   : > { %s546_s9 = smov (!%p171_p4, %s459_s9), 8 }
   0xf   : > { %s414_s13 = sshll.u32 %s546_s9, 3  ;;  %s403_s27 = sshll.u32 %s546_s9, 2 }
  0x10   : > { %s178_s16 = scalar_lea.vmem %s538_s0, %s414_s13  ;;  %s189_s30 = scalar_lea.vmem %s540_s2, %s403_s27 }
  0x11   : > { %v190_v0 = vld [vmem:[%s178_s16] sm:$0xf]  ;;  %v191_v1 = vld [vmem:[%s178_s16 + $0x4] sm:$0x1] }
  0x12   : > { %v192_v2 = vunpack.c.l.bf16 %v190_v0  ;;  %v193_v3 = vunpack.c.l.bf16 %v191_v1  ;;  %v411_v0 = vld [vmem:[%s539_s1 + $0x20] sm:$0xf] }
  0x14   : > { %v195_v4 = vsel %vm194_vm0, %v193_v3, -inf }
  0x15   : > { %v196_v5 = vmax.f32 %v192_v2, %v195_v4 }
  0x17   : > { %v197_v6 = vrot.slane %v196_v5, 4 }
  0x19   : > { %v198_v7 = vmax.f32 %v196_v5, %v197_v6 }
  0x1b   : > { %v199_v8 = vrot.slane %v198_v7, 2 }
  0x1d   : > { %v200_v9 = vmax.f32 %v198_v7, %v199_v8  ;;  %v293_v7 = vunpack.c.l.bf16 %v411_v0 }
  0x1f   : > { %v201_v10 = vrot.slane %v200_v9, 1 }
  0x21   : > { %v202_v11 = vmax.f32 %v200_v9, %v201_v10 }
  0x23   : > { %v203_v12 = vsub.f32 %v192_v2, %v202_v11  ;;  %v204_v13 = vsub.f32 %v193_v3, %v202_v11  ;;  %v284_v3 = vunpack.c.h.bf16 %v409_v53 }
  0x25   : > { %v205_v14 = vmul.f32 1.442695, %v203_v12  ;;  %v207_v15 = vmul.f32 1.442695, %v204_v13 }
  0x27   : > { %439 = vpow2.f32 %v205_v14 }
  0x28   : > { %441 = vpow2.f32 %v207_v15 }
  0x31   : > { %v440_v16 = vpop.eup %439 }
  0x32   : > { %v442_v17 = vpop.eup %441 }
  0x33   : > { %v209_v18 = vsel %vm194_vm0, %v442_v17, 0.0 }
  0x34   : > { %v210_v19 = vadd.f32 %v440_v16, %v209_v18 }
  0x36   : > { %v211_v20 = vrot.slane %v210_v19, 4 }
  0x38   : > { %v212_v21 = vadd.f32 %v211_v20, %v210_v19 }
  0x3a   : > { %v213_v22 = vrot.slane %v212_v21, 2 }
  0x3c   : > { %v214_v23 = vadd.f32 %v213_v22, %v212_v21 }
  0x3e   : > { %v215_v24 = vrot.slane %v214_v23, 1 }
  0x40   : > { %v216_v25 = vadd.f32 %v215_v24, %v214_v23 }
  0x42   : > { %443 = vrcp.f32 %v216_v25 }
  0x4c   : > { %v444_v34 = vpop.eup %443 }
  0x4d   : > { %v218_v36 = vmul.f32 %v444_v34, %v440_v16  ;;  %v219_v60 = vmul.f32 %v444_v34, %v442_v17 }
  0x4f   : > { %v225_v43 = vrot.slane %v218_v36, %v224_v30  ;;  %v234_v44 = vrot.slane %v218_v36, %v233_v31  ;;  %v243_v45 = vrot.slane %v218_v36, %v242_v32  ;;  %v252_v46 = vrot.slane %v218_v36, %v251_v33 }
  0x50   : > { %v261_v52 = vrot.slane %v218_v36, %v260_v40  ;;  %v270_v57 = vrot.slane %v218_v36, %v269_v42  ;;  %v279_v63 = vrot.slane %v218_v36, %v278_v48  ;;  %v288_v4 = vrot.slane %v218_v36, %v287_v58 }
  0x51   : > { %v226_v49 = vmul.f32 %v225_v43, %v221_v35  ;;  %v235_v50 = vmul.f32 %v234_v44, %v230_v37  ;;  %v244_v51 = vmul.f32 %v243_v45, %v239_v38  ;;  %v253_v56 = vmul.f32 %v252_v46, %v248_v41 }
  0x52   : > { %v262_v62 = vmul.f32 %v261_v52, %v257_v47  ;;  %v271_v2 = vmul.f32 %v270_v57, %v266_v54  ;;  %v280_v6 = vmul.f32 %v279_v63, %v275_v59  ;;  %v297_v8 = vrot.slane %v219_v60, %v224_v30 }
  0x53   : > { %v236_v55 = vadd.f32 %v235_v50, %v226_v49  ;;  %v289_v10 = vmul.f32 %v288_v4, %v284_v3 }
  0x54   : > { %v298_v12 = vmul.f32 %v297_v8, %v293_v7 }
  0x55   : > { %v245_v61 = vadd.f32 %v244_v51, %v236_v55 }
  0x57   : > { %v254_v1 = vadd.f32 %v253_v56, %v245_v61 }
  0x59   : > { %v263_v5 = vadd.f32 %v262_v62, %v254_v1 }
  0x5b   : > { %v272_v9 = vadd.f32 %v271_v2, %v263_v5 }
  0x5d   : > { %v281_v11 = vadd.f32 %v280_v6, %v272_v9 }
  0x5f   : > { %v290_v13 = vadd.f32 %v289_v10, %v281_v11 }
  0x61   : > { %v299_v14 = vadd.f32 %v298_v12, %v290_v13 }
  0x63   : > { %v300_v15 = vpack.c.bf16 %v299_v14, %v299_v14 }
  0x65   : > { %301 = vst [vmem:[%s189_s30] sm:$0xf] %v300_v15 }
  0x66 PF: > { %s12_s11 = sadd.s32 1, %s467_s11   ;;  %s541_s9 = smov %s463_s10 }
  0x67   : > { %p9_p5 = scmp.ge.s32.totalorder %s12_s11, 11   ;;  %s542_s10 = smov %s544_s12 }
  0x69   :  { %11 = sbr.rel (!%p9_p5) target bundleno = 2 (0x2), region = 69 }

// kernel: outlooker_forward.10
= control target key start
LH: loop header
LB: loop body
LE: loop exit
PB: predicated region body
PF: predicated region fallthrough
CT: control target
= control target key end

     0   :  { %vm65_vm0 = vcmask 261120   ;;  %vm187_vm1 = vcmask 523264   ;;  %vm241_vm2 = vcmask 516096   ;;  %s589_s1 = inlined_call_operand.vmem [shape: bf16[32,64], index: 1, kind: input, shape index: {}]   ;;  %s590_s0 = inlined_call_operand.vmem [shape: f32[128,32], index: 0, kind: input, shape index: {}]   ;;  %s591_s2 = inlined_call_operand.vmem [shape: f32[1,64], index: 2, kind: input, shape index: {}]   ;;  %s592_s3 = inlined_call_operand.vmem [shape: f32[128,64], index: 3, kind: output, shape index: {0}]   ;;  %s593_s4 = inlined_call_operand.vmem [shape: f32[1,1,64], index: 4, kind: output, shape index: {1}]   ;;  %s594_s5 = inlined_call_operand.vmem [shape: f32[1,1,64], index: 5, kind: output, shape index: {2}]  }
   0x1   :  { %v354_v0 = vld [vmem:[%s589_s1] sm:$0xff]   ;;  %v355_v1 = vld [vmem:[%s589_s1 + $0x8] sm:$0xff]   ;;  %v20_v5 = vld [vmem:[%s590_s0 + $0x10] sm:$0xff] }
   0x2   :  { %330 = vmatprep.subr.bf16.mxu0 %v354_v0  ;;  %v18_v2 = vld [vmem:[%s590_s0] sm:$0xff]  ;;  %v19_v3 = vld [vmem:[%s590_s0 + $0x8] sm:$0xff]  ;;  %350 = vmatprep.subr.bf16.mxu1 %v354_v0  ;;  %v21_v6 = vld [vmem:[%s590_s0 + $0x18] sm:$0xff] }
   0x3   :  { %331 = vmatpush3.bf16.msra.mxu0 %v354_v0  ;;  %v34_v4 = vpack.c.bf16 %v19_v3, %v18_v2  ;;  %352 = vmatpush3.bf16.msra.mxu1 %v354_v0  ;;  %v22_v7 = vld [vmem:[%s590_s0 + $0x20] sm:$0xff]  ;;  %v23_v8 = vld [vmem:[%s590_s0 + $0x28] sm:$0xff]  ;;  %v28_v11 = vld [vmem:[%s590_s0 + $0x50] sm:$0xff]  ;;  %v35_v13 = vpack.c.bf16 %v21_v6, %v20_v5 }
   0x4   :  { %332 = vmatprep.subr.bf16.mxu0 %v355_v1  ;;  %351 = vmatprep.subr.bf16.mxu1 %v355_v1  ;;  %v26_v9 = vld [vmem:[%s590_s0 + $0x40] sm:$0xff]  ;;  %v27_v10 = vld [vmem:[%s590_s0 + $0x48] sm:$0xff]  ;;  %v29_v12 = vld [vmem:[%s590_s0 + $0x58] sm:$0xff]  ;;  %v36_v18 = vpack.c.bf16 %v23_v8, %v22_v7 }
   0x5   :  { %334 = vmatprep.mubr.msk.bf16.mxu0 %vm65_vm0, %v34_v4  ;;  %v38_v14 = vpack.c.bf16 %v27_v10, %v26_v9  ;;  %v39_v15 = vpack.c.bf16 %v29_v12, %v28_v11  ;;  %v30_v16 = vld [vmem:[%s590_s0 + $0x60] sm:$0xff]  ;;  %v31_v17 = vld [vmem:[%s590_s0 + $0x68] sm:$0xff]  ;;  %v24_v20 = vld [vmem:[%s590_s0 + $0x30] sm:$0xff] }
   0x6   :  { %v40_v19 = vpack.c.bf16 %v31_v17, %v30_v16  ;;  %v25_v21 = vld [vmem:[%s590_s0 + $0x38] sm:$0xff]  ;;  %v32_v22 = vld [vmem:[%s590_s0 + $0x70] sm:$0xff]  ;;  %v451_v26 = vld [vmem:[%s591_s2] ss:$0 sm:$0xff] }
   0x7   :  { %333 = vmatpush3.bf16.msra.mxu0 %v355_v1  ;;  %353 = vmatpush3.bf16.msra.mxu1 %v355_v1  ;;  %v33_v23 = vld [vmem:[%s590_s0 + $0x78] sm:$0xff]  ;;  %v37_v24 = vpack.c.bf16 %v25_v21, %v24_v20 }
   0x8   :  { %342 = vmatprep.mubr.msk.bf16.mxu1 %vm65_vm0, %v38_v14  ;;  %v41_v25 = vpack.c.bf16 %v33_v23, %v32_v22 }
   0xa   :  { %335 = vmatmul.mubr.msk.bf16.vlgmr.msra.gmra.mrb[0].mxu0 %vm65_vm0, %v35_v13  ;;  %343 = vmatmul.mubr.msk.bf16.vlgmr.msra.gmra.mrb[0].mxu1 %vm65_vm0, %v39_v15 }
   0xb   :  { %338 = vmatprep.mubr.msk.bf16.mxu0 %vm65_vm0, %v36_v18  ;;  %346 = vmatprep.mubr.msk.bf16.mxu1 %vm65_vm0, %v40_v19 }
  0x12   :  { %339 = vmatmul.mubr.msk.bf16.gmra.mrb[4].mxu0 %vm65_vm0, %v37_v24  ;;  %347 = vmatmul.mubr.msk.bf16.gmra.mrb[4].mxu1 %vm65_vm0, %v41_v25 }
  0xdd   :  { %v336_v27 = vpop.f32.mrb[0].mxu0  ;;  %v344_v28 = vpop.f32.mrb[0].mxu1 }
  0xde   :  { %v133_v29 = vadd.f32 %v336_v27, %v451_v26  ;;  %v124_v30 = vpop.f32.mrb[1].mxu0  ;;  %v455_v31 = vadd.f32 %v344_v28, %v451_v26  ;;  %v156_v32 = vpop.f32.mrb[1].mxu1 }
  0xdf   :  { %v125_v33 = vadd.f32 %v451_v26, %v124_v30  ;;  %v337_v34 = vpop.f32.mrb[2].mxu0  ;;  %v459_v35 = vadd.f32 %v451_v26, %v156_v32  ;;  %v345_v36 = vpop.f32.mrb[2].mxu1 }
  0xe0   :  { %190 = vst.msk [vmem:[%s592_s3 + $0x10] sm:$0xff] %vm187_vm1, %v133_v29  ;;  %v136_v37 = vadd.f32 %v337_v34, %v451_v26  ;;  %v127_v38 = vpop.f32.mrb[3].mxu0  ;;  %198 = vst.msk [vmem:[%s592_s3 + $0x50] sm:$0xff] %vm187_vm1, %v455_v31  ;;  %v159_v39 = vpop.f32.mrb[3].mxu1  ;;  %v245_v42 = vmul.f32 %v133_v29, %v133_v29  ;;  %v492_v48 = vadd.f32 %v345_v36, %v451_v26  ;;  %v207_v49 = vsel %vm187_vm1, %v133_v29, 0.0 }
  0xe1   :  { %188 = vst.msk [vmem:[%s592_s3] sm:$0xff] %vm187_vm1, %v125_v33  ;;  %v243_v40 = vmul.f32 %v125_v33, %v125_v33  ;;  %v128_v41 = vadd.f32 %v451_v26, %v127_v38  ;;  %196 = vst.msk [vmem:[%s592_s3 + $0x40] sm:$0xff] %vm187_vm1, %v459_v35  ;;  %v204_v43 = vsel %vm187_vm1, %v125_v33, 0.0  ;;  %v160_v53 = vadd.f32 %v451_v26, %v159_v39 }
  0xe2   :  { %191 = vst.msk [vmem:[%s592_s3 + $0x18] sm:$0xff] %vm187_vm1, %v136_v37  ;;  %v246_v46 = vmul.f32 %v136_v37, %v136_v37  ;;  %199 = vst.msk [vmem:[%s592_s3 + $0x58] sm:$0xff] %vm187_vm1, %v492_v48  ;;  %v262_v60 = vsel %vm187_vm1, %v245_v42, 0.0  ;;  %v209_v61 = vsel %vm187_vm1, %v136_v37, 0.0  ;;  %v251_v14 = vmul.f32 %v459_v35, %v459_v35 }
  0xe3   :  { %189 = vst.msk [vmem:[%s592_s3 + $0x8] sm:$0xff] %vm187_vm1, %v128_v41  ;;  %v205_v44 = vsel %vm187_vm1, %v128_v41, 0.0  ;;  %v244_v45 = vmul.f32 %v128_v41, %v128_v41  ;;  %v259_v50 = vsel %vm187_vm1, %v243_v40, 0.0  ;;  %197 = vst.msk [vmem:[%s592_s3 + $0x48] sm:$0xff] %vm187_vm1, %v160_v53  ;;  %v219_v30 = vsel %vm187_vm1, %v459_v35, 0.0 }
  0xe4   :  { %v206_v47 = vadd.f32 %v205_v44, %v204_v43  ;;  %v264_v1 = vsel %vm187_vm1, %v246_v46, 0.0  ;;  %v274_v36 = vsel %vm187_vm1, %v251_v14, 0.0  ;;  %v252_v37 = vmul.f32 %v160_v53, %v160_v53 }
  0xe5   :  { %v260_v51 = vsel %vm187_vm1, %v244_v45, 0.0  ;;  %v340_v52 = vpop.f32.mrb[4].mxu0  ;;  %v348_v54 = vpop.f32.mrb[4].mxu1  ;;  %v221_v39 = vsel %vm187_vm1, %v160_v53, 0.0  ;;  %v253_v40 = vmul.f32 %v455_v31, %v455_v31  ;;  %v223_v42 = vsel %vm187_vm1, %v455_v31, 0.0 }
  0xe6   :  { %v208_v55 = vadd.f32 %v207_v49, %v206_v47  ;;  %v261_v56 = vadd.f32 %v260_v51, %v259_v50  ;;  %v149_v57 = vadd.f32 %v340_v52, %v451_v26  ;;  %v140_v58 = vpop.f32.mrb[5].mxu0  ;;  %v172_v59 = vpop.f32.mrb[5].mxu1  ;;  %v181_v20 = vadd.f32 %v348_v54, %v451_v26 }
  0xe7   :  { %v141_v62 = vadd.f32 %v451_v26, %v140_v58  ;;  %v341_v63 = vpop.f32.mrb[6].mxu0  ;;  %v349_v0 = vpop.f32.mrb[6].mxu1  ;;  %v173_v21 = vadd.f32 %v451_v26, %v172_v59  ;;  %v254_v44 = vmul.f32 %v492_v48, %v492_v48  ;;  %v276_v46 = vsel %vm187_vm1, %v252_v37, 0.0 }
  0xe8   :  { %v263_v2 = vadd.f32 %v262_v60, %v261_v56  ;;  %194 = vst.msk [vmem:[%s592_s3 + $0x30] sm:$0xff] %vm187_vm1, %v149_v57  ;;  %v210_v3 = vadd.f32 %v209_v61, %v208_v55  ;;  %v143_v4 = vpop.f32.mrb[7].mxu0  ;;  %v175_v5 = vpop.f32.mrb[7].mxu1  ;;  %v152_v8 = vadd.f32 %v341_v63, %v451_v26  ;;  %v249_v15 = vmul.f32 %v149_v57, %v149_v57 }
  0xe9   :  { %192 = vst.msk [vmem:[%s592_s3 + $0x20] sm:$0xff] %vm187_vm1, %v141_v62  ;;  %v211_v6 = vsel %vm187_vm1, %v141_v62, 0.0  ;;  %v247_v7 = vmul.f32 %v141_v62, %v141_v62  ;;  %v144_v9 = vadd.f32 %v451_v26, %v143_v4  ;;  %v215_v19 = vsel %vm187_vm1, %v149_v57, 0.0  ;;  %202 = vst.msk [vmem:[%s592_s3 + $0x70] sm:$0xff] %vm187_vm1, %v181_v20 }
  0xea   :  { %v212_v10 = vadd.f32 %v211_v6, %v210_v3  ;;  %v265_v11 = vadd.f32 %v264_v1, %v263_v2  ;;  %195 = vst.msk [vmem:[%s592_s3 + $0x38] sm:$0xff] %vm187_vm1, %v152_v8  ;;  %v184_v22 = vadd.f32 %v349_v0, %v451_v26  ;;  %v250_v23 = vmul.f32 %v152_v8, %v152_v8 }
  0xeb   :  { %v266_v12 = vsel %vm187_vm1, %v247_v7, 0.0  ;;  %193 = vst.msk [vmem:[%s592_s3 + $0x28] sm:$0xff] %vm187_vm1, %v144_v9  ;;  %v213_v13 = vsel %vm187_vm1, %v144_v9, 0.0  ;;  %v248_v18 = vmul.f32 %v144_v9, %v144_v9  ;;  %v176_v27 = vadd.f32 %v451_v26, %v175_v5  ;;  %200 = vst.msk [vmem:[%s592_s3 + $0x60] sm:$0xff] %vm187_vm1, %v173_v21 }
  0xec   :  { %v267_v16 = vadd.f32 %v266_v12, %v265_v11  ;;  %v214_v17 = vadd.f32 %v213_v13, %v212_v10  ;;  %v217_v28 = vsel %vm187_vm1, %v152_v8, 0.0  ;;  %203 = vst.msk [vmem:[%s592_s3 + $0x78] sm:$0xff] %vm187_vm1, %v184_v22  ;;  %v270_v26 = vsel %vm187_vm1, %v249_v15, 0.0 }
  0xed   :  { %v268_v25 = vsel %vm187_vm1, %v248_v18, 0.0  ;;  %201 = vst.msk [vmem:[%s592_s3 + $0x68] sm:$0xff] %vm187_vm1, %v176_v27  ;;  %v272_v34 = vsel %vm187_vm1, %v250_v23, 0.0  ;;  %v255_v47 = vmul.f32 %v173_v21, %v173_v21  ;;  %v225_v49 = vsel %vm187_vm1, %v492_v48, 0.0 }
  0xee   :  { %v216_v24 = vadd.f32 %v215_v19, %v214_v17  ;;  %v269_v29 = vadd.f32 %v268_v25, %v267_v16  ;;  %v227_v51 = vsel %vm187_vm1, %v173_v21, 0.0  ;;  %v278_v52 = vsel %vm187_vm1, %v253_v40, 0.0 }
  0xef   :  { %v280_v31 = vsel %vm187_vm1, %v254_v44, 0.0  ;;  %v282_v56 = vsel %vm187_vm1, %v255_v47, 0.0  ;;  %v256_v57 = vmul.f32 %v176_v27, %v176_v27  ;;  %v229_v59 = vsel %vm187_vm1, %v176_v27, 0.0 }
  0xf0   :  { %v218_v32 = vadd.f32 %v217_v28, %v216_v24  ;;  %v271_v33 = vadd.f32 %v270_v26, %v269_v29  ;;  %v257_v60 = vmul.f32 %v181_v20, %v181_v20  ;;  %v231_v48 = vsel %vm187_vm1, %v181_v20, 0.0 }
  0xf1   :  { %v258_v63 = vmul.f32 %v184_v22, %v184_v22  ;;  %v284_v1 = vsel %vm187_vm1, %v256_v57, 0.0  ;;  %v233_v2 = vsel %vm187_vm1, %v184_v22, 0.0 }
  0xf2   :  { %v220_v35 = vadd.f32 %v219_v30, %v218_v32  ;;  %v273_v38 = vadd.f32 %v272_v34, %v271_v33  ;;  %v286_v4 = vsel %vm187_vm1, %v257_v60, 0.0 }
  0xf3   :  { %v288_v7 = vsel %vm187_vm1, %v258_v63, 0.0 }
  0xf4   :  { %v222_v41 = vadd.f32 %v221_v39, %v220_v35  ;;  %v275_v43 = vadd.f32 %v274_v36, %v273_v38 }
  0xf6   :  { %v224_v45 = vadd.f32 %v223_v42, %v222_v41  ;;  %v277_v50 = vadd.f32 %v276_v46, %v275_v43 }
  0xf8   :  { %v226_v53 = vadd.f32 %v225_v49, %v224_v45  ;;  %v279_v54 = vadd.f32 %v278_v52, %v277_v50 }
  0xfa   :  { %v228_v55 = vadd.f32 %v227_v51, %v226_v53  ;;  %v281_v58 = vadd.f32 %v280_v31, %v279_v54 }
  0xfc   :  { %v230_v61 = vadd.f32 %v229_v59, %v228_v55  ;;  %v283_v62 = vadd.f32 %v282_v56, %v281_v58 }
  0xfe   :  { %v232_v0 = vadd.f32 %v231_v48, %v230_v61  ;;  %v285_v3 = vadd.f32 %v284_v1, %v283_v62 }
 0x100   :  { %v234_v5 = vadd.f32 %v233_v2, %v232_v0  ;;  %v287_v6 = vadd.f32 %v286_v4, %v285_v3 }
 0x102   :  { %v235_v8 = vrot.slane %v234_v5, 4  ;;  %v289_v9 = vadd.f32 %v288_v7, %v287_v6 }
 0x104   :  { %v236_v10 = vadd.f32 %v235_v8, %v234_v5  ;;  %v290_v11 = vrot.slane %v289_v9, 4 }
 0x106   :  { %v237_v12 = vrot.slane %v236_v10, 2  ;;  %v291_v13 = vadd.f32 %v290_v11, %v289_v9 }
 0x108   :  { %v238_v14 = vadd.f32 %v237_v12, %v236_v10  ;;  %v292_v15 = vrot.slane %v291_v13, 2 }
 0x10a   :  { %v239_v16 = vrot.slane %v238_v14, 1  ;;  %v293_v17 = vadd.f32 %v292_v15, %v291_v13 }
 0x10c   :  { %v240_v18 = vadd.f32 %v239_v16, %v238_v14  ;;  %v294_v19 = vrot.slane %v293_v17, 1 }
 0x10e   :  { %242 = vst.msk [vmem:[%s593_s4] sm:$0x1] %vm241_vm2, %v240_v18  ;;  %v295_v20 = vadd.f32 %v294_v19, %v293_v17 }
 0x110   :  { %296 = vst.msk [vmem:[%s594_s5] sm:$0x1] %vm241_vm2, %v295_v20 }

// kernel: outlooker_forward.9
= control target key start
LH: loop header
LB: loop body
LE: loop exit
PB: predicated region body
PF: predicated region fallthrough
CT: control target
= control target key end

     0   :  { %vm100_vm0 = vcmask 261120   ;;  %vm307_vm1 = vcmask 253952   ;;  %s706_s1 = inlined_call_operand.vmem [shape: bf16[32,32], index: 1, kind: input, shape index: {}]   ;;  %s707_s0 = inlined_call_operand.vmem [shape: bf16[128,32], index: 0, kind: input, shape index: {}]   ;;  %s708_s2 = inlined_call_operand.vmem [shape: f32[1,32], index: 2, kind: input, shape index: {}]   ;;  %s709_s3 = inlined_call_operand.vmem [shape: f32[128,32], index: 3, kind: input, shape index: {}]   ;;  %s710_s4 = inlined_call_operand.vmem [shape: f32[128,32], index: 4, kind: output, shape index: {0}]   ;;  %s711_s5 = inlined_call_operand.vmem [shape: f32[1,1,32], index: 5, kind: output, shape index: {1}]   ;;  %s712_s6 = inlined_call_operand.vmem [shape: f32[1,1,32], index: 6, kind: output, shape index: {2}]  }
   0x1   :  { %v428_v0 = vld [vmem:[%s706_s1] sm:$0xff]   ;;  %v429_v1 = vld [vmem:[%s706_s1 + $0x8] sm:$0xff]   ;;  %v432_v4 = vld [vmem:[%s707_s0 + $0x10] sm:$0xff]  }
   0x2   :  { %404 = vmatprep.subr.bf16.mxu0 %v428_v0  ;;  %v430_v2 = vld [vmem:[%s707_s0] sm:$0xff]   ;;  %424 = vmatprep.subr.bf16.mxu1 %v428_v0  ;;  %v431_v3 = vld [vmem:[%s707_s0 + $0x8] sm:$0xff]   ;;  %v436_v7 = vld [vmem:[%s707_s0 + $0x30] sm:$0xff]  }
   0x3   :  { %405 = vmatpush3.bf16.msra.mxu0 %v428_v0  ;;  %426 = vmatpush3.bf16.msra.mxu1 %v428_v0  ;;  %v434_v5 = vld [vmem:[%s707_s0 + $0x20] sm:$0xff]   ;;  %v435_v6 = vld [vmem:[%s707_s0 + $0x28] sm:$0xff]   ;;  %v433_v8 = vld [vmem:[%s707_s0 + $0x18] sm:$0xff]  }
   0x4   :  { %406 = vmatprep.subr.bf16.mxu0 %v429_v1  ;;  %408 = vmatprep.mubr.msk.bf16.mxu0 %vm100_vm0, %v430_v2  ;;  %v437_v9 = vld [vmem:[%s707_s0 + $0x38] sm:$0xff]   ;;  %v514_v10 = vld [vmem:[%s708_s2] ss:$0 sm:$0xff]  ;;  %v224_v12 = vld [vmem:[%s709_s3 + $0x10] sm:$0xff] }
   0x5   :  { %425 = vmatprep.subr.bf16.mxu1 %v429_v1  ;;  %416 = vmatprep.mubr.msk.bf16.mxu1 %vm100_vm0, %v434_v5  ;;  %v232_v14 = vld [vmem:[%s709_s3 + $0x50] sm:$0xff]  ;;  %v222_v17 = vld [vmem:[%s709_s3] sm:$0xff]  ;;  %v225_v23 = vld [vmem:[%s709_s3 + $0x18] sm:$0xff] }
   0x6   :  { %v230_v20 = vld [vmem:[%s709_s3 + $0x40] sm:$0xff]  ;;  %v223_v29 = vld [vmem:[%s709_s3 + $0x8] sm:$0xff]  ;;  %v233_v41 = vld [vmem:[%s709_s3 + $0x58] sm:$0xff] }
   0x7   :  { %407 = vmatpush3.bf16.msra.mxu0 %v429_v1  ;;  %427 = vmatpush3.bf16.msra.mxu1 %v429_v1  ;;  %v231_v42 = vld [vmem:[%s709_s3 + $0x48] sm:$0xff]  ;;  %v228_v48 = vld [vmem:[%s709_s3 + $0x30] sm:$0xff]  ;;  %v226_v55 = vld [vmem:[%s709_s3 + $0x20] sm:$0xff] }
   0x8   :  { %v227_v5 = vld [vmem:[%s709_s3 + $0x28] sm:$0xff] }
   0xa   :  { %409 = vmatmul.mubr.msk.bf16.vlgmr.msra.gmra.mrb[0].mxu0 %vm100_vm0, %v431_v3  ;;  %417 = vmatmul.mubr.msk.bf16.vlgmr.msra.gmra.mrb[0].mxu1 %vm100_vm0, %v435_v6  ;;  %v229_v3 = vld [vmem:[%s709_s3 + $0x38] sm:$0xff] }
   0xb   :  { %412 = vmatprep.mubr.msk.bf16.mxu0 %vm100_vm0, %v432_v4  ;;  %420 = vmatprep.mubr.msk.bf16.mxu1 %vm100_vm0, %v436_v7 }
  0x12   :  { %413 = vmatmul.mubr.msk.bf16.gmra.mrb[4].mxu0 %vm100_vm0, %v433_v8  ;;  %421 = vmatmul.mubr.msk.bf16.gmra.mrb[4].mxu1 %vm100_vm0, %v437_v9 }
  0xdd   :  { %v410_v11 = vpop.f32.mrb[0].mxu0  ;;  %v418_v13 = vpop.f32.mrb[0].mxu1 }
  0xde   :  { %v168_v15 = vadd.f32 %v410_v11, %v514_v10  ;;  %v159_v16 = vpop.f32.mrb[1].mxu0  ;;  %v200_v18 = vadd.f32 %v418_v13, %v514_v10  ;;  %v191_v19 = vpop.f32.mrb[1].mxu1 }
  0xdf   :  { %v160_v21 = vadd.f32 %v514_v10, %v159_v16  ;;  %v411_v22 = vpop.f32.mrb[2].mxu0  ;;  %v192_v24 = vadd.f32 %v514_v10, %v191_v19  ;;  %v419_v25 = vpop.f32.mrb[2].mxu1 }
  0xe0   :  { %v240_v26 = vadd.f32 %v224_v12, %v168_v15  ;;  %v171_v27 = vadd.f32 %v411_v22, %v514_v10  ;;  %v162_v28 = vpop.f32.mrb[3].mxu0  ;;  %v539_v30 = vadd.f32 %v232_v14, %v200_v18  ;;  %v194_v31 = vpop.f32.mrb[3].mxu1  ;;  %v203_v38 = vadd.f32 %v419_v25, %v514_v10 }
  0xe1   :  { %v238_v32 = vadd.f32 %v222_v17, %v160_v21  ;;  %v163_v33 = vadd.f32 %v514_v10, %v162_v28  ;;  %v542_v34 = vadd.f32 %v230_v20, %v192_v24  ;;  %v195_v39 = vadd.f32 %v514_v10, %v194_v31  ;;  %v236_v28 = vld [vmem:[%s709_s3 + $0x70] sm:$0xff] }
  0xe2   :  { %256 = vst.msk [vmem:[%s710_s4 + $0x10] sm:$0xff] %vm100_vm0, %v240_v26  ;;  %v241_v35 = vadd.f32 %v225_v23, %v171_v27  ;;  %264 = vst.msk [vmem:[%s710_s4 + $0x50] sm:$0xff] %vm100_vm0, %v539_v30  ;;  %v273_v40 = vsel %vm100_vm0, %v240_v26, 0.0  ;;  %v311_v43 = vmul.f32 %v240_v26, %v240_v26  ;;  %v591_v60 = vadd.f32 %v233_v41, %v203_v38 }
  0xe3   :  { %254 = vst.msk [vmem:[%s710_s4] sm:$0xff] %vm100_vm0, %v238_v32  ;;  %v309_v36 = vmul.f32 %v238_v32, %v238_v32  ;;  %v239_v37 = vadd.f32 %v223_v29, %v163_v33  ;;  %262 = vst.msk [vmem:[%s710_s4 + $0x40] sm:$0xff] %vm100_vm0, %v542_v34  ;;  %v270_v44 = vsel %vm100_vm0, %v238_v32, 0.0  ;;  %v593_v61 = vadd.f32 %v231_v42, %v195_v39 }
  0xe4   :  { %257 = vst.msk [vmem:[%s710_s4 + $0x18] sm:$0xff] %vm100_vm0, %v241_v35  ;;  %v312_v51 = vmul.f32 %v241_v35, %v241_v35  ;;  %v328_v7 = vsel %vm100_vm0, %v311_v43, 0.0  ;;  %v275_v8 = vsel %vm100_vm0, %v241_v35, 0.0  ;;  %265 = vst.msk [vmem:[%s710_s4 + $0x58] sm:$0xff] %vm100_vm0, %v591_v60  ;;  %v285_v23 = vsel %vm100_vm0, %v542_v34, 0.0  ;;  %v234_v35 = vld [vmem:[%s709_s3 + $0x60] sm:$0xff] }
  0xe5   :  { %255 = vst.msk [vmem:[%s710_s4 + $0x8] sm:$0xff] %vm100_vm0, %v239_v37  ;;  %v271_v45 = vsel %vm100_vm0, %v239_v37, 0.0  ;;  %v310_v46 = vmul.f32 %v239_v37, %v239_v37  ;;  %v414_v47 = vpop.f32.mrb[4].mxu0  ;;  %v422_v49 = vpop.f32.mrb[4].mxu1  ;;  %v325_v50 = vsel %vm100_vm0, %v309_v36, 0.0  ;;  %263 = vst.msk [vmem:[%s710_s4 + $0x48] sm:$0xff] %vm100_vm0, %v593_v61  ;;  %v317_v32 = vmul.f32 %v542_v34, %v542_v34 }
  0xe6   :  { %v272_v52 = vadd.f32 %v271_v45, %v270_v44  ;;  %v184_v53 = vadd.f32 %v414_v47, %v514_v10  ;;  %v175_v54 = vpop.f32.mrb[5].mxu0  ;;  %v207_v56 = vpop.f32.mrb[5].mxu1  ;;  %v330_v12 = vsel %vm100_vm0, %v312_v51, 0.0  ;;  %v216_v33 = vadd.f32 %v422_v49, %v514_v10  ;;  %v237_v36 = vld [vmem:[%s709_s3 + $0x78] sm:$0xff]  ;;  %v235_v34 = vld [vmem:[%s709_s3 + $0x68] sm:$0xff] }
  0xe7   :  { %v326_v57 = vsel %vm100_vm0, %v310_v46, 0.0  ;;  %v176_v58 = vadd.f32 %v514_v10, %v175_v54  ;;  %v415_v59 = vpop.f32.mrb[6].mxu0  ;;  %v423_v62 = vpop.f32.mrb[6].mxu1  ;;  %v208_v39 = vadd.f32 %v514_v10, %v207_v56  ;;  %v319_v56 = vmul.f32 %v539_v30, %v539_v30 }
  0xe8   :  { %v274_v63 = vadd.f32 %v273_v40, %v272_v52  ;;  %v327_v0 = vadd.f32 %v326_v57, %v325_v50  ;;  %v244_v1 = vadd.f32 %v228_v48, %v184_v53  ;;  %v187_v2 = vadd.f32 %v415_v59, %v514_v10  ;;  %v178_v4 = vpop.f32.mrb[7].mxu0  ;;  %v210_v6 = vpop.f32.mrb[7].mxu1 }
  0xe9   :  { %v242_v9 = vadd.f32 %v226_v55, %v176_v58  ;;  %v179_v11 = vadd.f32 %v514_v10, %v178_v4  ;;  %v219_v40 = vadd.f32 %v423_v62, %v514_v10  ;;  %v252_v43 = vadd.f32 %v236_v28, %v216_v33 }
  0xea   :  { %v329_v13 = vadd.f32 %v328_v7, %v327_v0  ;;  %260 = vst.msk [vmem:[%s710_s4 + $0x30] sm:$0xff] %vm100_vm0, %v244_v1  ;;  %v276_v14 = vadd.f32 %v275_v8, %v274_v63  ;;  %v245_v17 = vadd.f32 %v229_v3, %v187_v2  ;;  %v315_v24 = vmul.f32 %v244_v1, %v244_v1 }
  0xeb   :  { %258 = vst.msk [vmem:[%s710_s4 + $0x20] sm:$0xff] %vm100_vm0, %v242_v9  ;;  %v277_v15 = vsel %vm100_vm0, %v242_v9, 0.0  ;;  %v313_v16 = vmul.f32 %v242_v9, %v242_v9  ;;  %v243_v18 = vadd.f32 %v227_v5, %v179_v11  ;;  %v281_v29 = vsel %vm100_vm0, %v244_v1, 0.0  ;;  %268 = vst.msk [vmem:[%s710_s4 + $0x70] sm:$0xff] %vm100_vm0, %v252_v43 }
  0xec   :  { %v278_v19 = vadd.f32 %v277_v15, %v276_v14  ;;  %v331_v20 = vadd.f32 %v330_v12, %v329_v13  ;;  %261 = vst.msk [vmem:[%s710_s4 + $0x38] sm:$0xff] %vm100_vm0, %v245_v17  ;;  %v316_v31 = vmul.f32 %v245_v17, %v245_v17  ;;  %v283_v41 = vsel %vm100_vm0, %v245_v17, 0.0 }
  0xed   :  { %v332_v21 = vsel %vm100_vm0, %v313_v16, 0.0  ;;  %259 = vst.msk [vmem:[%s710_s4 + $0x28] sm:$0xff] %vm100_vm0, %v243_v18  ;;  %v279_v22 = vsel %vm100_vm0, %v243_v18, 0.0  ;;  %v314_v27 = vmul.f32 %v243_v18, %v243_v18  ;;  %v211_v44 = vadd.f32 %v514_v10, %v210_v6 }
  0xee   :  { %v333_v25 = vadd.f32 %v332_v21, %v331_v20  ;;  %v280_v26 = vadd.f32 %v279_v22, %v278_v19  ;;  %v336_v45 = vsel %vm100_vm0, %v315_v24, 0.0  ;;  %v250_v47 = vadd.f32 %v234_v35, %v208_v39 }
  0xef   :  { %v334_v38 = vsel %vm100_vm0, %v314_v27, 0.0  ;;  %v253_v48 = vadd.f32 %v237_v36, %v219_v40  ;;  %v251_v50 = vadd.f32 %v235_v34, %v211_v44  ;;  %v338_v51 = vsel %vm100_vm0, %v316_v31, 0.0 }
  0xf0   :  { %v282_v37 = vadd.f32 %v281_v29, %v280_v26  ;;  %v335_v42 = vadd.f32 %v334_v38, %v333_v25  ;;  %v340_v53 = vsel %vm100_vm0, %v317_v32, 0.0  ;;  %v318_v10 = vmul.f32 %v593_v61, %v593_v61  ;;  %266 = vst.msk [vmem:[%s710_s4 + $0x60] sm:$0xff] %vm100_vm0, %v250_v47 }
  0xf1   :  { %269 = vst.msk [vmem:[%s710_s4 + $0x78] sm:$0xff] %vm100_vm0, %v253_v48  ;;  %v287_v55 = vsel %vm100_vm0, %v593_v61, 0.0  ;;  %267 = vst.msk [vmem:[%s710_s4 + $0x68] sm:$0xff] %vm100_vm0, %v251_v50  ;;  %v289_v58 = vsel %vm100_vm0, %v539_v30, 0.0  ;;  %v320_v62 = vmul.f32 %v591_v60, %v591_v60  ;;  %v321_v61 = vmul.f32 %v250_v47, %v250_v47 }
  0xf2   :  { %v284_v46 = vadd.f32 %v283_v41, %v282_v37  ;;  %v337_v49 = vadd.f32 %v336_v45, %v335_v42  ;;  %v342_v0 = vsel %vm100_vm0, %v318_v10, 0.0  ;;  %v291_v1 = vsel %vm100_vm0, %v591_v60, 0.0 }
  0xf3   :  { %v293_v3 = vsel %vm100_vm0, %v250_v47, 0.0  ;;  %v344_v4 = vsel %vm100_vm0, %v319_v56, 0.0  ;;  %v346_v30 = vsel %vm100_vm0, %v320_v62, 0.0  ;;  %v348_v8 = vsel %vm100_vm0, %v321_v61, 0.0 }
  0xf4   :  { %v286_v52 = vadd.f32 %v285_v23, %v284_v46  ;;  %v339_v54 = vadd.f32 %v338_v51, %v337_v49  ;;  %v322_v9 = vmul.f32 %v251_v50, %v251_v50  ;;  %v295_v12 = vsel %vm100_vm0, %v251_v50, 0.0 }
  0xf5   :  { %v323_v13 = vmul.f32 %v252_v43, %v252_v43  ;;  %v297_v60 = vsel %vm100_vm0, %v252_v43, 0.0  ;;  %v324_v16 = vmul.f32 %v253_v48, %v253_v48  ;;  %v299_v19 = vsel %vm100_vm0, %v253_v48, 0.0 }
  0xf6   :  { %v288_v57 = vadd.f32 %v287_v55, %v286_v52  ;;  %v341_v59 = vadd.f32 %v340_v53, %v339_v54  ;;  %v350_v18 = vsel %vm100_vm0, %v322_v9, 0.0 }
  0xf7   :  { %v352_v21 = vsel %vm100_vm0, %v323_v13, 0.0  ;;  %v354_v24 = vsel %vm100_vm0, %v324_v16, 0.0 }
  0xf8   :  { %v290_v63 = vadd.f32 %v289_v58, %v288_v57  ;;  %v343_v2 = vadd.f32 %v342_v0, %v341_v59 }
  0xfa   :  { %v292_v5 = vadd.f32 %v291_v1, %v290_v63  ;;  %v345_v6 = vadd.f32 %v344_v4, %v343_v2 }
  0xfc   :  { %v294_v7 = vadd.f32 %v293_v3, %v292_v5  ;;  %v347_v11 = vadd.f32 %v346_v30, %v345_v6 }
  0xfe   :  { %v296_v14 = vadd.f32 %v295_v12, %v294_v7  ;;  %v349_v15 = vadd.f32 %v348_v8, %v347_v11 }
 0x100   :  { %v298_v17 = vadd.f32 %v297_v60, %v296_v14  ;;  %v351_v20 = vadd.f32 %v350_v18, %v349_v15 }
 0x102   :  { %v300_v22 = vadd.f32 %v299_v19, %v298_v17  ;;  %v353_v23 = vadd.f32 %v352_v21, %v351_v20 }
 0x104   :  { %v301_v25 = vrot.slane %v300_v22, 4  ;;  %v355_v26 = vadd.f32 %v354_v24, %v353_v23 }
 0x106   :  { %v302_v27 = vadd.f32 %v301_v25, %v300_v22  ;;  %v356_v28 = vrot.slane %v355_v26, 4 }
 0x108   :  { %v303_v29 = vrot.slane %v302_v27, 2  ;;  %v357_v31 = vadd.f32 %v356_v28, %v355_v26 }
 0x10a   :  { %v304_v32 = vadd.f32 %v303_v29, %v302_v27  ;;  %v358_v33 = vrot.slane %v357_v31, 2 }
 0x10c   :  { %v305_v35 = vrot.slane %v304_v32, 1  ;;  %v359_v36 = vadd.f32 %v358_v33, %v357_v31 }
 0x10e   :  { %v306_v37 = vadd.f32 %v305_v35, %v304_v32  ;;  %v360_v38 = vrot.slane %v359_v36, 1 }
 0x110   :  { %308 = vst.msk [vmem:[%s711_s5] sm:$0x1] %vm307_vm1, %v306_v37  ;;  %v361_v39 = vadd.f32 %v360_v38, %v359_v36 }
 0x112   :  { %362 = vst.msk [vmem:[%s712_s6] sm:$0x1] %vm307_vm1, %v361_v39 }

// kernel: outlooker_forward.11
= control target key start
LH: loop header
LB: loop body
LE: loop exit
PB: predicated region body
PF: predicated region fallthrough
CT: control target
= control target key end

     0   :  { %vm114_vm0 = vcmask 523264   ;;  %s574_s0 = inlined_call_operand.vmem [shape: bf16[128,64], index: 0, kind: input, shape index: {}]   ;;  %s575_s1 = inlined_call_operand.vmem [shape: bf16[64,32], index: 1, kind: input, shape index: {}]   ;;  %s576_s2 = inlined_call_operand.vmem [shape: f32[1,32], index: 2, kind: input, shape index: {}]   ;;  %s577_s3 = inlined_call_operand.vmem [shape: f32[128,32], index: 3, kind: input, shape index: {}]   ;;  %s578_s4 = inlined_call_operand.hbm [shape: f32[128,32], index: 4, kind: output, shape index: {}]  }
   0x1   :  { %v369_v0 = vld [vmem:[%s575_s1] sm:$0xff]   ;;  %v370_v1 = vld [vmem:[%s575_s1 + $0x8] sm:$0xff]   ;;  %v371_v2 = vld [vmem:[%s575_s1 + $0x10] sm:$0xff]  }
   0x2   :  { %334 = vmatprep.subr.bf16.mxu0 %v369_v0  ;;  %358 = vmatprep.subr.bf16.mxu1 %v369_v0  ;;  %v373_v3 = vld [vmem:[%s574_s0] sm:$0xff]   ;;  %v372_v5 = vld [vmem:[%s575_s1 + $0x18] sm:$0xff]  }
   0x3   :  { %335 = vmatpush3.bf16.msra.mxu0 %v369_v0  ;;  %362 = vmatpush3.bf16.msra.mxu1 %v369_v0  ;;  %v374_v4 = vld [vmem:[%s574_s0 + $0x20] sm:$0xff]  }
   0x4   :  { %336 = vmatprep.subr.bf16.mxu0 %v370_v1  ;;  %359 = vmatprep.subr.bf16.mxu1 %v370_v1 }
   0x5   :  { %342 = vmatprep.mubr.msk.bf16.mxu0 %vm114_vm0, %v373_v3  ;;  %350 = vmatprep.mubr.msk.bf16.mxu1 %vm114_vm0, %v374_v4 }
   0x7   :  { %337 = vmatpush3.bf16.msra.mxu0 %v370_v1  ;;  %363 = vmatpush3.bf16.msra.mxu1 %v370_v1 }
   0x8   :  { %338 = vmatprep.subr.bf16.mxu0 %v371_v2  ;;  %360 = vmatprep.subr.bf16.mxu1 %v371_v2 }
   0xb   :  { %339 = vmatpush3.bf16.msra.mxu0 %v371_v2  ;;  %364 = vmatpush3.bf16.msra.mxu1 %v371_v2 }
   0xc   :  { %340 = vmatprep.subr.bf16.mxu0 %v372_v5  ;;  %361 = vmatprep.subr.bf16.mxu1 %v372_v5 }
   0xd   :  { %9 = vsyncpa [#allocation3], 0  ;;  %v375_v6 = vld [vmem:[%s574_s0 + $0x8] sm:$0xff]   ;;  %v377_v8 = vld [vmem:[%s574_s0 + $0x10] sm:$0xff]   ;;  %vm268_vm1 = vcmask 261120   ;;  %s405_s13 = smov [#allocation2]  }
   0xe   :  { %v376_v7 = vld [vmem:[%s574_s0 + $0x28] sm:$0xff]   ;;  %v378_v9 = vld [vmem:[%s574_s0 + $0x30] sm:$0xff]   ;;  %v379_v10 = vld [vmem:[%s574_s0 + $0x18] sm:$0xff]   ;;  %s290_s14 = sshll.u32 %s405_s13, 4  ;;  %s291_s14 = int_to_ptr.vmem [resolvable:$true] %s290_s14 }
   0xf   :  { %341 = vmatpush3.bf16.msra.mxu0 %v372_v5  ;;  %365 = vmatpush3.bf16.msra.mxu1 %v372_v5  ;;  %v380_v11 = vld [vmem:[%s574_s0 + $0x38] sm:$0xff]   ;;  %v480_v12 = vld [vmem:[%s576_s2] ss:$0 sm:$0xff]  ;;  %v238_v14 = vld [vmem:[%s577_s3 + $0x10] sm:$0xff]  ;;  %p386_p1 = scmp.lt.s32.totalorder %s291_s14, %s291_s14 }
  0x10   :  { %v246_v16 = vld [vmem:[%s577_s3 + $0x50] sm:$0xff]  ;;  %v236_v20 = vld [vmem:[%s577_s3] sm:$0xff]  ;;  %v239_v26 = vld [vmem:[%s577_s3 + $0x18] sm:$0xff] }
  0x11   :  { %v244_v22 = vld [vmem:[%s577_s3 + $0x40] sm:$0xff]  ;;  %v247_v28 = vld [vmem:[%s577_s3 + $0x58] sm:$0xff]  ;;  %v237_v34 = vld [vmem:[%s577_s3 + $0x8] sm:$0xff] }
  0x12   :  { %343 = vmatmul.mubr.msk.bf16.vlgmr.msra.gmra.mrb[0].mxu0 %vm114_vm0, %v375_v6  ;;  %351 = vmatmul.mubr.msk.bf16.vlgmr.msra.gmra.mrb[0].mxu1 %vm114_vm0, %v376_v7  ;;  %v245_v36 = vld [vmem:[%s577_s3 + $0x48] sm:$0xff]  ;;  %v242_v46 = vld [vmem:[%s577_s3 + $0x30] sm:$0xff]  ;;  %v240_v52 = vld [vmem:[%s577_s3 + $0x20] sm:$0xff] }
  0x13   :  { %346 = vmatprep.mubr.msk.bf16.mxu0 %vm114_vm0, %v377_v8  ;;  %354 = vmatprep.mubr.msk.bf16.mxu1 %vm114_vm0, %v378_v9  ;;  %v250_v48 = vld [vmem:[%s577_s3 + $0x70] sm:$0xff]  ;;  %v248_v54 = vld [vmem:[%s577_s3 + $0x60] sm:$0xff]  ;;  %v243_v58 = vld [vmem:[%s577_s3 + $0x38] sm:$0xff] }
  0x14   :  { %v251_v60 = vld [vmem:[%s577_s3 + $0x78] sm:$0xff]  ;;  %v241_v2 = vld [vmem:[%s577_s3 + $0x28] sm:$0xff] }
  0x15   :  { %v249_v4 = vld [vmem:[%s577_s3 + $0x68] sm:$0xff]  ;;  %s381_s3 = scalar_lea.vmem %s291_s14, 2048 }
  0x16   :  { %p382_p0 = scmp.ne.s32.totalorder %s291_s14, %s381_s3  ;;  %p387_p2 = scmp.lt.s32.totalorder %s381_s3, %s381_s3 }
  0x18   :  { %p388_p3 = por %p387_p2, %p386_p1 }
  0x1a   :  { %347 = vmatmul.mubr.msk.bf16.gmra.mrb[4].mxu0 %vm114_vm0, %v379_v10  ;;  %355 = vmatmul.mubr.msk.bf16.gmra.mrb[4].mxu1 %vm114_vm0, %v380_v11  ;;  %p389_p4 = pnand %p388_p3, %p382_p0 }
  0xe5   :  { %v344_v13 = vpop.f32.mrb[0].mxu0  ;;  %v352_v15 = vpop.f32.mrb[0].mxu1 }
  0xe6   :  { %v182_v17 = vadd.f32 %v344_v13, %v480_v12  ;;  %v214_v18 = vadd.f32 %v352_v15, %v480_v12  ;;  %v173_v19 = vpop.f32.mrb[1].mxu0  ;;  %v205_v21 = vpop.f32.mrb[1].mxu1 }
  0xe7   :  { %v174_v23 = vadd.f32 %v480_v12, %v173_v19  ;;  %v206_v24 = vadd.f32 %v480_v12, %v205_v21  ;;  %v345_v25 = vpop.f32.mrb[2].mxu0  ;;  %v353_v27 = vpop.f32.mrb[2].mxu1 }
  0xe8   :  { %v254_v29 = vadd.f32 %v238_v14, %v182_v17  ;;  %v262_v30 = vadd.f32 %v246_v16, %v214_v18  ;;  %v185_v31 = vadd.f32 %v345_v25, %v480_v12  ;;  %v217_v32 = vadd.f32 %v353_v27, %v480_v12  ;;  %v176_v33 = vpop.f32.mrb[3].mxu0  ;;  %v208_v35 = vpop.f32.mrb[3].mxu1 }
  0xe9   :  { %v252_v37 = vadd.f32 %v236_v20, %v174_v23  ;;  %v260_v38 = vadd.f32 %v244_v22, %v206_v24  ;;  %v177_v39 = vadd.f32 %v480_v12, %v176_v33  ;;  %v209_v40 = vadd.f32 %v480_v12, %v208_v35 }
  0xea   :  { %271 = vst.msk [vmem:[#allocation2 + $0x10] sm:$0xff] %vm268_vm1, %v254_v29  ;;  %279 = vst.msk [vmem:[#allocation2 + $0x50] sm:$0xff] %vm268_vm1, %v262_v30  ;;  %v255_v41 = vadd.f32 %v239_v26, %v185_v31  ;;  %v263_v42 = vadd.f32 %v247_v28, %v217_v32 }
  0xeb   :  { %269 = vst.msk [vmem:[#allocation2] sm:$0xff] %vm268_vm1, %v252_v37  ;;  %277 = vst.msk [vmem:[#allocation2 + $0x40] sm:$0xff] %vm268_vm1, %v260_v38  ;;  %v253_v43 = vadd.f32 %v237_v34, %v177_v39  ;;  %v261_v44 = vadd.f32 %v245_v36, %v209_v40 }
  0xec   :  { %272 = vst.msk [vmem:[#allocation2 + $0x18] sm:$0xff] %vm268_vm1, %v255_v41  ;;  %280 = vst.msk [vmem:[#allocation2 + $0x58] sm:$0xff] %vm268_vm1, %v263_v42 }
  0xed   :  { %270 = vst.msk [vmem:[#allocation2 + $0x8] sm:$0xff] %vm268_vm1, %v253_v43  ;;  %278 = vst.msk [vmem:[#allocation2 + $0x48] sm:$0xff] %vm268_vm1, %v261_v44  ;;  %v348_v45 = vpop.f32.mrb[4].mxu0  ;;  %v356_v47 = vpop.f32.mrb[4].mxu1 }
  0xee   :  { %v198_v49 = vadd.f32 %v348_v45, %v480_v12  ;;  %v230_v50 = vadd.f32 %v356_v47, %v480_v12  ;;  %v189_v51 = vpop.f32.mrb[5].mxu0  ;;  %v221_v53 = vpop.f32.mrb[5].mxu1 }
  0xef   :  { %v190_v55 = vadd.f32 %v480_v12, %v189_v51  ;;  %v222_v56 = vadd.f32 %v480_v12, %v221_v53  ;;  %v349_v57 = vpop.f32.mrb[6].mxu0  ;;  %v357_v59 = vpop.f32.mrb[6].mxu1 }
  0xf0   :  { %v258_v61 = vadd.f32 %v242_v46, %v198_v49  ;;  %v266_v62 = vadd.f32 %v250_v48, %v230_v50  ;;  %v201_v63 = vadd.f32 %v349_v57, %v480_v12  ;;  %v233_v0 = vadd.f32 %v357_v59, %v480_v12  ;;  %v192_v1 = vpop.f32.mrb[7].mxu0  ;;  %v224_v3 = vpop.f32.mrb[7].mxu1 }
  0xf1   :  { %v256_v5 = vadd.f32 %v240_v52, %v190_v55  ;;  %v264_v6 = vadd.f32 %v248_v54, %v222_v56  ;;  %v193_v7 = vadd.f32 %v480_v12, %v192_v1  ;;  %v225_v8 = vadd.f32 %v480_v12, %v224_v3 }
  0xf2   :  { %275 = vst.msk [vmem:[#allocation2 + $0x30] sm:$0xff] %vm268_vm1, %v258_v61  ;;  %283 = vst.msk [vmem:[#allocation2 + $0x70] sm:$0xff] %vm268_vm1, %v266_v62  ;;  %v259_v9 = vadd.f32 %v243_v58, %v201_v63  ;;  %v267_v10 = vadd.f32 %v251_v60, %v233_v0 }
  0xf3   :  { %273 = vst.msk [vmem:[#allocation2 + $0x20] sm:$0xff] %vm268_vm1, %v256_v5  ;;  %281 = vst.msk [vmem:[#allocation2 + $0x60] sm:$0xff] %vm268_vm1, %v264_v6  ;;  %v257_v11 = vadd.f32 %v241_v2, %v193_v7  ;;  %v265_v13 = vadd.f32 %v249_v4, %v225_v8 }
  0xf4   :  { %276 = vst.msk [vmem:[#allocation2 + $0x38] sm:$0xff] %vm268_vm1, %v259_v9  ;;  %284 = vst.msk [vmem:[#allocation2 + $0x78] sm:$0xff] %vm268_vm1, %v267_v10 }
  0xf5   :  { %274 = vst.msk [vmem:[#allocation2 + $0x28] sm:$0xff] %vm268_vm1, %v257_v11  ;;  %282 = vst.msk [vmem:[#allocation2 + $0x68] sm:$0xff] %vm268_vm1, %v265_v13 }
  0xf6   :  { %392 = shalt.err (!%p389_p4)
}
  0xf7   :  { %s393_s19 = scalar_lea.hbm %s578_s4, 2048 }
  0xf8   :  { %p394_p5 = scmp.ne.s32.totalorder %s578_s4, %s393_s19  ;;  %p397_p6 = scmp.lt.u32.totalorder %s393_s19, %s578_s4 }
  0xfa   :  { %p399_p7 = pnand %p397_p6, %p394_p5 }
  0xfc   :  { %402 = shalt.err (!%p399_p7)
}
  0xfd   :  { %s406_s24 = smov 128   ;;  %s407_s25 = smov 8  }
  0xfe   :  { %296 = dma.vmem_to_hbm [thread:$0]  %s291_s14, 2048, %s578_s4, [#allocation3], %s406_s24, %s406_s24, %s407_s25  }
  0xff   :  { %403 = dma.done.wait [#allocation3], 2048  }
 0x100   :  { %404 = vsyncadd [#allocation3], 4294965248 }
 0x101   :  { %300 = vsyncpa [#allocation3], 1 }

</bundles_post_ra>
